<compile_context>
chip_gen: v5e
topology: v5e:2x2
jax: 0.10.0
libtpu: 0.0.40
codegen_flags: <defaults>
</compile_context>

<pallas_src>
import functools

import jax
import jax.numpy as jnp
from jax import lax
from jax.experimental import pallas as pl
from jax.experimental.pallas import tpu as pltpu

BN_EPS = 1e-5


def _round_up(x, m):
    return (x + m - 1) // m * m


def _default_bf16_epilogue():
    """bf16 VALU exists on v6e/v7x; v5e and older have no bf16 VPU -> keep f32."""
    try:
        kind = jax.devices()[0].device_kind.lower()
    except Exception:
        return False
    return ("v6" in kind) or ("v7" in kind) or ("tpu7" in kind)


def occ_decoder_kernel(x_ref,
                       w1_ref, t1_ref,
                       w2_ref, t2_ref,
                       w3_ref, t3_ref,
                       w4_ref, t4_ref,
                       w5_ref, b5_ref,
                       o_ref, *, bf16_epilogue):
    # x_ref: (C_in, T) bf16 tile, points on the lane axis.
    # wN_ref: (cout, cin) bf16 with the BN scale folded in.
    # tN_ref: (cout, T) shift, pre-broadcast to tile width (bf16 for layers 1-3 when
    #         bf16_epilogue, f32 otherwise; t4 is always f32).
    # w5_ref: (64, out_feat) f32; b5_ref: (out_feat, T) f32.
    h = x_ref[...]                                               # bf16 (C_in, T)

    def hidden(acc_f32, t_ref):
        # Bias + ReLU epilogue; result feeds the next MXU matmul as bf16.
        if bf16_epilogue:
            return jnp.maximum(acc_f32.astype(jnp.bfloat16) + t_ref[...], 0)
        return jnp.maximum(acc_f32 + t_ref[...], 0.0).astype(jnp.bfloat16)

    a = jnp.dot(w1_ref[...], h, preferred_element_type=jnp.float32)
    h = hidden(a, t1_ref)
    a = jnp.dot(w2_ref[...], h, preferred_element_type=jnp.float32)
    h = hidden(a, t2_ref)
    a = jnp.dot(w3_ref[...], h, preferred_element_type=jnp.float32)
    h = hidden(a, t3_ref)
    a = jnp.dot(w4_ref[...], h, preferred_element_type=jnp.float32)
    h4 = jnp.maximum(a + t4_ref[...], 0.0)                       # f32 (64, T)

    if w5_ref.shape[1] == 1:
        # Degenerate 64 -> 1 projection: VPU multiply + sublane reduce (skip the MXU).
        o = jnp.sum(w5_ref[...] * h4, axis=0, keepdims=True) + b5_ref[...]
    else:
        # General fallback: contract the 64-channel axis on the MXU.
        o = lax.dot_general(w5_ref[...], h4, (((0,), (0,)), ((), ())),
                            preferred_element_type=jnp.float32) + b5_ref[...]

    o_ref[...] = o.astype(o_ref.dtype)


def occ_decoder_forward(x_ncw, params, *, tile_n=2048, bf16_epilogue=None):
    """x_ncw: (B, C_in, N) float32 in PyTorch NCW layout. Returns (B, out_feat, N) f32."""
    assert tile_n % 128 == 0, "tile_n must be a multiple of 128 (lane width)"
    if bf16_epilogue is None:
        bf16_epilogue = _default_bf16_epilogue()

    B, C_in, N = x_ncw.shape
    out_feat = params["w5t"].shape[1]

    # Clamp the tile to the (128-aligned) point count so small-N calls don't burn
    # cycles on padding; when B == 1 split the points axis so the grid has >= 2
    # parallel steps (v7x has 2 TensorCores).
    n128 = _round_up(N, 128)
    tile = min(tile_n, n128)
    if B == 1 and n128 >= 256 and tile > n128 // 2:
        tile = _round_up(n128 // 2, 128)
    n_pad = pl.cdiv(N, tile) * tile

    # Feed the kernel bf16 input (halves HBM traffic + input double-buffer VMEM).
    x = x_ncw.astype(jnp.bfloat16)
    if n_pad != N:
        x = jnp.pad(x, ((0, 0), (0, 0), (0, n_pad - N)))

    # Pre-broadcast the per-channel shifts to full tile width so the in-kernel bias
    # add is a pure element-wise add (no broadcast materialization per grid step).
    ep_dt = jnp.bfloat16 if bf16_epilogue else jnp.float32
    t1 = jnp.broadcast_to(params["t1"].astype(ep_dt), (params["t1"].shape[0], tile))
    t2 = jnp.broadcast_to(params["t2"].astype(ep_dt), (params["t2"].shape[0], tile))
    t3 = jnp.broadcast_to(params["t3"].astype(ep_dt), (params["t3"].shape[0], tile))
    t4 = jnp.broadcast_to(params["t4"], (params["t4"].shape[0], tile))      # f32
    b5 = jnp.broadcast_to(params["b5"], (out_feat, tile))                   # f32

    flat_params = (
        params["w1"], t1,
        params["w2"], t2,
        params["w3"], t3,
        params["w4"], t4,
        params["w5t"], b5,
    )

    def full_spec(p):
        # Un-tiled, VMEM-resident parameter: same block every grid step (no re-DMA).
        return pl.BlockSpec(p.shape, lambda b, j: (0, 0))

    in_specs = [pl.BlockSpec((None, C_in, tile), lambda b, j: (b, 0, j))]
    in_specs += [full_spec(p) for p in flat_params]

    kernel = functools.partial(occ_decoder_kernel, bf16_epilogue=bf16_epilogue)

    out = pl.pallas_call(
        kernel,
        out_shape=jax.ShapeDtypeStruct((B, out_feat, n_pad), jnp.float32),
        grid_spec=pltpu.PrefetchScalarGridSpec(
            num_scalar_prefetch=0,
            grid=(B, n_pad // tile),
            in_specs=in_specs,
            out_specs=pl.BlockSpec((None, out_feat, tile), lambda b, j: (b, 0, j)),
        ),
        compiler_params=pltpu.CompilerParams(
            dimension_semantics=("parallel", "parallel")),
    )(x, *flat_params)

    # Padded columns contain bias garbage; this slice must stay.
    return out[:, :, :N] if n_pad != N else out


def init_params(key, in_feat, out_feat):
    """Deterministic synthetic parameters matching the PyTorch module's shapes.

    Conv1d(cin, cout, 1): weight (cout, cin, 1) stored squeezed as (cout, cin).
    BatchNorm1d(cout) in eval mode (gamma=1, beta=0, running_mean=0, running_var=1)
    folded in: the scale is multiplied into the weight rows (then cast to bf16);
    the shift is kept as an f32 (cout, 1) bias that the wrapper broadcasts.
    """
    dims = [(in_feat, 128), (128, 128), (128, 128), (128, 64), (64, out_feat)]
    params = {}
    for li, (cin, cout) in enumerate(dims, start=1):
        key, kw, kb = jax.random.split(key, 3)
        bound = 1.0 / jnp.sqrt(float(cin))
        w = jax.random.uniform(kw, (cout, cin), jnp.float32, -bound, bound)
        b = jax.random.uniform(kb, (cout,), jnp.float32, -bound, bound)
        if li < 5:
            gamma = jnp.ones((cout,), jnp.float32)
            beta = jnp.zeros((cout,), jnp.float32)
            r_mean = jnp.zeros((cout,), jnp.float32)
            r_var = jnp.ones((cout,), jnp.float32)
            scale = gamma / jnp.sqrt(r_var + BN_EPS)
            params[f"w{li}"] = (w * scale[:, None]).astype(jnp.bfloat16)
            params[f"t{li}"] = ((b - r_mean) * scale + beta).reshape(cout, 1)
        else:
            params["w5t"] = jnp.transpose(w)          # (64, out_feat) f32
            params["b5"] = b.reshape(cout, 1)         # (out_feat, 1) f32
    return params


def occ_decoder_reference(x_ncw, params, *, bf16_epilogue):
    """Pure-JAX reference mirroring the kernel's math (bf16 MXU inputs, f32 accum)."""
    h = x_ncw.astype(jnp.bfloat16)                    # (B, C_in, N)
    for li in range(1, 4):
        w = params[f"w{li}"]                          # (cout, cin) bf16
        t = params[f"t{li}"]                          # (cout, 1) f32
        a = jnp.einsum("oc,bcn->bon", w, h, preferred_element_type=jnp.float32)
        if bf16_epilogue:
            h = jnp.maximum(a.astype(jnp.bfloat16) + t[None].astype(jnp.bfloat16), 0)
        else:
            h = jnp.maximum(a + t[None], 0.0).astype(jnp.bfloat16)
    a = jnp.einsum("oc,bcn->bon", params["w4"], h, preferred_element_type=jnp.float32)
    h4 = jnp.maximum(a + params["t4"][None], 0.0)     # f32
    w5 = params["w5t"]                                # (64, out_feat) f32
    b5 = params["b5"]                                 # (out_feat, 1) f32
    return jnp.einsum("co,bcn->bon", w5, h4,
                      preferred_element_type=jnp.float32) + b5[None]


if __name__ == "__main__":
    IN_FEAT, OUT_FEAT = 32, 1
    ep = _default_bf16_epilogue()

    key = jax.random.PRNGKey(0)
    key, kx1, kx2 = jax.random.split(key, 3)
    params = init_params(key, IN_FEAT, OUT_FEAT)

    fwd = jax.jit(functools.partial(occ_decoder_forward, tile_n=2048, bf16_epilogue=ep))

    # Case 1: small batched call (B=2, N=256) — tile clamps to 256, grid (2, 1).
    B1, N1 = 2, 256
    x1 = jax.random.normal(kx1, (B1, IN_FEAT, N1), jnp.float32)
    y1 = fwd(x1, params)
    jax.block_until_ready(y1)
    y1_ref = occ_decoder_reference(x1, params, bf16_epilogue=ep)
    assert y1.shape == (B1, OUT_FEAT, N1), y1.shape
    assert jnp.allclose(y1, y1_ref, atol=5e-3, rtol=5e-3), "case1 mismatch vs reference"

    # Case 2: B=1 with ragged N=300 — exercises padding + the >=2-step megacore split.
    B2, N2 = 1, 300
    x2 = jax.random.normal(kx2, (B2, IN_FEAT, N2), jnp.float32)
    y2 = fwd(x2, params)
    jax.block_until_ready(y2)
    y2_ref = occ_decoder_reference(x2, params, bf16_epilogue=ep)
    assert y2.shape == (B2, OUT_FEAT, N2), y2.shape
    assert jnp.allclose(y2, y2_ref, atol=5e-3, rtol=5e-3), "case2 mismatch vs reference"

    print("KERNEL_OK")
</pallas_src>

<mosaic_0001>
module attributes {stable_mosaic.version = 11 : i64} {
  func.func @occ_decoder_kernel(%arg0: i32, %arg1: i32, %arg2: memref<1x32x256xbf16, #tpu.memory_space<vmem>>, %arg3: memref<128x32xbf16, #tpu.memory_space<vmem>>, %arg4: memref<128x256xf32, #tpu.memory_space<vmem>>, %arg5: memref<128x128xbf16, #tpu.memory_space<vmem>>, %arg6: memref<128x256xf32, #tpu.memory_space<vmem>>, %arg7: memref<128x128xbf16, #tpu.memory_space<vmem>>, %arg8: memref<128x256xf32, #tpu.memory_space<vmem>>, %arg9: memref<64x128xbf16, #tpu.memory_space<vmem>>, %arg10: memref<64x256xf32, #tpu.memory_space<vmem>>, %arg11: memref<64x1xf32, #tpu.memory_space<vmem>>, %arg12: memref<1x256xf32, #tpu.memory_space<vmem>>, %arg13: memref<1x1x256xf32, #tpu.memory_space<vmem>>) attributes {dimension_semantics = [#tpu.dimension_semantics<parallel>, #tpu.dimension_semantics<parallel>], iteration_bounds = array<i64: 2, 1>, scalar_prefetch = 0 : i64, scratch_operands = 0 : i64, tpu.core_type = #tpu.core_type<tc>, window_params = [{transform_indices = @transform_0, window_bounds = array<i64: 1, 32, 256>}, {pipeline_mode = #tpu.pipeline_mode<synchronous>, transform_indices = @transform_1, window_bounds = array<i64: 128, 32>}, {pipeline_mode = #tpu.pipeline_mode<synchronous>, transform_indices = @transform_2, window_bounds = array<i64: 128, 256>}, {pipeline_mode = #tpu.pipeline_mode<synchronous>, transform_indices = @transform_3, window_bounds = array<i64: 128, 128>}, {pipeline_mode = #tpu.pipeline_mode<synchronous>, transform_indices = @transform_4, window_bounds = array<i64: 128, 256>}, {pipeline_mode = #tpu.pipeline_mode<synchronous>, transform_indices = @transform_5, window_bounds = array<i64: 128, 128>}, {pipeline_mode = #tpu.pipeline_mode<synchronous>, transform_indices = @transform_6, window_bounds = array<i64: 128, 256>}, {pipeline_mode = #tpu.pipeline_mode<synchronous>, transform_indices = @transform_7, window_bounds = array<i64: 64, 128>}, {pipeline_mode = #tpu.pipeline_mode<synchronous>, transform_indices = @transform_8, window_bounds = array<i64: 64, 256>}, {pipeline_mode = #tpu.pipeline_mode<synchronous>, transform_indices = @transform_9, window_bounds = array<i64: 64, 1>}, {pipeline_mode = #tpu.pipeline_mode<synchronous>, transform_indices = @transform_10, window_bounds = array<i64: 1, 256>}, {transform_indices = @transform_11, window_bounds = array<i64: 1, 1, 256>}]} {
    %c0 = arith.constant 0 : index
    %c0_0 = arith.constant 0 : index
    %c0_1 = arith.constant 0 : index
    %0 = vector.load %arg2[%c0, %c0_0, %c0_1] : memref<1x32x256xbf16, #tpu.memory_space<vmem>>, vector<1x32x256xbf16>
    %1 = vector.shape_cast %0 : vector<1x32x256xbf16> to vector<32x256xbf16>
    %c0_2 = arith.constant 0 : index
    %c0_3 = arith.constant 0 : index
    %2 = vector.load %arg3[%c0_2, %c0_3] : memref<128x32xbf16, #tpu.memory_space<vmem>>, vector<128x32xbf16>
    %cst = arith.constant dense<0.000000e+00> : vector<128x256xf32>
    %3 = tpu.matmul %2, %1, %cst {dimension_numbers = #tpu.dot_dimension_numbers<[1], [0], [0], [1], [0, 0, 1, 1], [], []>} : vector<128x32xbf16>, vector<32x256xbf16>, vector<128x256xf32> -> vector<128x256xf32>
    %c0_4 = arith.constant 0 : index
    %c0_5 = arith.constant 0 : index
    %4 = vector.load %arg4[%c0_4, %c0_5] : memref<128x256xf32, #tpu.memory_space<vmem>>, vector<128x256xf32>
    %5 = arith.addf %3, %4 : vector<128x256xf32>
    %cst_6 = arith.constant 0.000000e+00 : f32
    %6 = vector.broadcast %cst_6 : f32 to vector<128x256xf32>
    %7 = arith.maximumf %5, %6 : vector<128x256xf32>
    %8 = arith.truncf %7 : vector<128x256xf32> to vector<128x256xbf16>
    %c0_7 = arith.constant 0 : index
    %c0_8 = arith.constant 0 : index
    %9 = vector.load %arg5[%c0_7, %c0_8] : memref<128x128xbf16, #tpu.memory_space<vmem>>, vector<128x128xbf16>
    %cst_9 = arith.constant dense<0.000000e+00> : vector<128x256xf32>
    %10 = tpu.matmul %9, %8, %cst_9 {dimension_numbers = #tpu.dot_dimension_numbers<[1], [0], [0], [1], [0, 0, 1, 1], [], []>} : vector<128x128xbf16>, vector<128x256xbf16>, vector<128x256xf32> -> vector<128x256xf32>
    %c0_10 = arith.constant 0 : index
    %c0_11 = arith.constant 0 : index
    %11 = vector.load %arg6[%c0_10, %c0_11] : memref<128x256xf32, #tpu.memory_space<vmem>>, vector<128x256xf32>
    %12 = arith.addf %10, %11 : vector<128x256xf32>
    %cst_12 = arith.constant 0.000000e+00 : f32
    %13 = vector.broadcast %cst_12 : f32 to vector<128x256xf32>
    %14 = arith.maximumf %12, %13 : vector<128x256xf32>
    %15 = arith.truncf %14 : vector<128x256xf32> to vector<128x256xbf16>
    %c0_13 = arith.constant 0 : index
    %c0_14 = arith.constant 0 : index
    %16 = vector.load %arg7[%c0_13, %c0_14] : memref<128x128xbf16, #tpu.memory_space<vmem>>, vector<128x128xbf16>
    %cst_15 = arith.constant dense<0.000000e+00> : vector<128x256xf32>
    %17 = tpu.matmul %16, %15, %cst_15 {dimension_numbers = #tpu.dot_dimension_numbers<[1], [0], [0], [1], [0, 0, 1, 1], [], []>} : vector<128x128xbf16>, vector<128x256xbf16>, vector<128x256xf32> -> vector<128x256xf32>
    %c0_16 = arith.constant 0 : index
    %c0_17 = arith.constant 0 : index
    %18 = vector.load %arg8[%c0_16, %c0_17] : memref<128x256xf32, #tpu.memory_space<vmem>>, vector<128x256xf32>
    %19 = arith.addf %17, %18 : vector<128x256xf32>
    %cst_18 = arith.constant 0.000000e+00 : f32
    %20 = vector.broadcast %cst_18 : f32 to vector<128x256xf32>
    %21 = arith.maximumf %19, %20 : vector<128x256xf32>
    %22 = arith.truncf %21 : vector<128x256xf32> to vector<128x256xbf16>
    %c0_19 = arith.constant 0 : index
    %c0_20 = arith.constant 0 : index
    %23 = vector.load %arg9[%c0_19, %c0_20] : memref<64x128xbf16, #tpu.memory_space<vmem>>, vector<64x128xbf16>
    %cst_21 = arith.constant dense<0.000000e+00> : vector<64x256xf32>
    %24 = tpu.matmul %23, %22, %cst_21 {dimension_numbers = #tpu.dot_dimension_numbers<[1], [0], [0], [1], [0, 0, 1, 1], [], []>} : vector<64x128xbf16>, vector<128x256xbf16>, vector<64x256xf32> -> vector<64x256xf32>
    %c0_22 = arith.constant 0 : index
    %c0_23 = arith.constant 0 : index
    %25 = vector.load %arg10[%c0_22, %c0_23] : memref<64x256xf32, #tpu.memory_space<vmem>>, vector<64x256xf32>
    %26 = arith.addf %24, %25 : vector<64x256xf32>
    %cst_24 = arith.constant 0.000000e+00 : f32
    %27 = vector.broadcast %cst_24 : f32 to vector<64x256xf32>
    %28 = arith.maximumf %26, %27 : vector<64x256xf32>
    %c0_25 = arith.constant 0 : index
    %c0_26 = arith.constant 0 : index
    %29 = vector.load %arg11[%c0_25, %c0_26] : memref<64x1xf32, #tpu.memory_space<vmem>>, vector<64x1xf32>
    %30 = vector.broadcast %29 : vector<64x1xf32> to vector<64x256xf32>
    %31 = arith.mulf %30, %28 : vector<64x256xf32>
    %cst_27 = arith.constant dense<0.000000e+00> : vector<256xf32>
    %32 = vector.multi_reduction <add>, %31, %cst_27 [0] : vector<64x256xf32> to vector<256xf32>
    %33 = vector.shape_cast %32 : vector<256xf32> to vector<1x256xf32>
    %c0_28 = arith.constant 0 : index
    %c0_29 = arith.constant 0 : index
    %34 = vector.load %arg12[%c0_28, %c0_29] : memref<1x256xf32, #tpu.memory_space<vmem>>, vector<1x256xf32>
    %35 = arith.addf %33, %34 : vector<1x256xf32>
    %c0_30 = arith.constant 0 : index
    %c0_31 = arith.constant 0 : index
    %c0_32 = arith.constant 0 : index
    %36 = vector.load %arg13[%c0_30, %c0_31, %c0_32] : memref<1x1x256xf32, #tpu.memory_space<vmem>>, vector<1x1x256xf32>
    %37 = vector.shape_cast %36 : vector<1x1x256xf32> to vector<1x256xf32>
    %38 = vector.shape_cast %35 : vector<1x256xf32> to vector<1x1x256xf32>
    tpu.vector_store %arg13[%c0_30, %c0_31, %c0_32], %38 {strides = array<i32>} : memref<1x1x256xf32, #tpu.memory_space<vmem>>, vector<1x1x256xf32>,
    return
  }
  func.func @transform_0(%arg0: i32, %arg1: i32) -> (i32, i32, i32) {
    %c0_i32 = arith.constant 0 : i32
    %c0_i32_0 = arith.constant 0 : i32
    return %arg0, %c0_i32, %arg1 : i32, i32, i32
  }
  func.func @transform_1(%arg0: i32, %arg1: i32) -> (i32, i32) {
    %c0_i32 = arith.constant 0 : i32
    %c0_i32_0 = arith.constant 0 : i32
    %c0_i32_1 = arith.constant 0 : i32
    return %c0_i32, %c0_i32_0 : i32, i32
  }
  func.func @transform_2(%arg0: i32, %arg1: i32) -> (i32, i32) {
    %c0_i32 = arith.constant 0 : i32
    %c0_i32_0 = arith.constant 0 : i32
    %c0_i32_1 = arith.constant 0 : i32
    return %c0_i32, %c0_i32_0 : i32, i32
  }
  func.func @transform_3(%arg0: i32, %arg1: i32) -> (i32, i32) {
    %c0_i32 = arith.constant 0 : i32
    %c0_i32_0 = arith.constant 0 : i32
    %c0_i32_1 = arith.constant 0 : i32
    return %c0_i32, %c0_i32_0 : i32, i32
  }
  func.func @transform_4(%arg0: i32, %arg1: i32) -> (i32, i32) {
    %c0_i32 = arith.constant 0 : i32
    %c0_i32_0 = arith.constant 0 : i32
    %c0_i32_1 = arith.constant 0 : i32
    return %c0_i32, %c0_i32_0 : i32, i32
  }
  func.func @transform_5(%arg0: i32, %arg1: i32) -> (i32, i32) {
    %c0_i32 = arith.constant 0 : i32
    %c0_i32_0 = arith.constant 0 : i32
    %c0_i32_1 = arith.constant 0 : i32
    return %c0_i32, %c0_i32_0 : i32, i32
  }
  func.func @transform_6(%arg0: i32, %arg1: i32) -> (i32, i32) {
    %c0_i32 = arith.constant 0 : i32
    %c0_i32_0 = arith.constant 0 : i32
    %c0_i32_1 = arith.constant 0 : i32
    return %c0_i32, %c0_i32_0 : i32, i32
  }
  func.func @transform_7(%arg0: i32, %arg1: i32) -> (i32, i32) {
    %c0_i32 = arith.constant 0 : i32
    %c0_i32_0 = arith.constant 0 : i32
    %c0_i32_1 = arith.constant 0 : i32
    return %c0_i32, %c0_i32_0 : i32, i32
  }
  func.func @transform_8(%arg0: i32, %arg1: i32) -> (i32, i32) {
    %c0_i32 = arith.constant 0 : i32
    %c0_i32_0 = arith.constant 0 : i32
    %c0_i32_1 = arith.constant 0 : i32
    return %c0_i32, %c0_i32_0 : i32, i32
  }
  func.func @transform_9(%arg0: i32, %arg1: i32) -> (i32, i32) {
    %c0_i32 = arith.constant 0 : i32
    %c0_i32_0 = arith.constant 0 : i32
    %c0_i32_1 = arith.constant 0 : i32
    return %c0_i32, %c0_i32_0 : i32, i32
  }
  func.func @transform_10(%arg0: i32, %arg1: i32) -> (i32, i32) {
    %c0_i32 = arith.constant 0 : i32
    %c0_i32_0 = arith.constant 0 : i32
    %c0_i32_1 = arith.constant 0 : i32
    return %c0_i32, %c0_i32_0 : i32, i32
  }
  func.func @transform_11(%arg0: i32, %arg1: i32) -> (i32, i32, i32) {
    %c0_i32 = arith.constant 0 : i32
    %c0_i32_0 = arith.constant 0 : i32
    return %arg0, %c0_i32, %arg1 : i32, i32, i32
  }
}

</mosaic_0001>

<bundles_post_ra>
// kernel: occ_decoder_forward.1
= control target key start
LH: loop header
LB: loop body
LE: loop exit
PB: predicated region body
PF: predicated region fallthrough
CT: control target
= control target key end

     0   :  { %s2565_s0 = inlined_call_operand.vmem [shape: bf16[2,32,256], index: 0, kind: input, shape index: {}]   ;;  %s2566_s1 = inlined_call_operand.vmem [shape: bf16[128,32], index: 1, kind: input, shape index: {}]   ;;  %s2567_s2 = inlined_call_operand.vmem [shape: f32[128,256], index: 2, kind: input, shape index: {}]   ;;  %s2568_s3 = inlined_call_operand.vmem [shape: bf16[128,128], index: 3, kind: input, shape index: {}]   ;;  %s2569_s4 = inlined_call_operand.vmem [shape: f32[128,256], index: 4, kind: input, shape index: {}]   ;;  %s2570_s5 = inlined_call_operand.vmem [shape: bf16[128,128], index: 5, kind: input, shape index: {}]   ;;  %s2571_s6 = inlined_call_operand.vmem [shape: f32[128,256], index: 6, kind: input, shape index: {}]   ;;  %s2572_s7 = inlined_call_operand.vmem [shape: bf16[64,128], index: 7, kind: input, shape index: {}]   ;;  %s2573_s8 = inlined_call_operand.vmem [shape: f32[64,256], index: 8, kind: input, shape index: {}]   ;;  %s2574_s9 = inlined_call_operand.vmem [shape: f32[64,1], index: 9, kind: input, shape index: {}]   ;;  %s2575_s10 = inlined_call_operand.vmem [shape: f32[1,256], index: 10, kind: input, shape index: {}]   ;;  %s2576_s11 = inlined_call_operand.hbm [shape: f32[2,1,256], index: 11, kind: output, shape index: {}]  }
   0x1   :  { %2577 = sst [smem:[#allocation5_spill]] %s2565_s0 }
   0x2   :  { %2578 = sst [smem:[#allocation6_spill]] %s2566_s1 }
   0x3   :  { %16 = vsyncpa [#allocation3], 0 }
   0x4   :  { %18 = vsyncpa [#allocation3 + $0x1], 0  ;;  %s1897_s17 = smov 0   ;;  %s1899_s18 = smov 0  }
   0x5   :  { %s1901_s19 = smov 0   ;;  %s1903_s20 = smov 0  }
   0x6   :  { %s1905_s21 = smov 0   ;;  %s1907_s22 = smov 0  }
   0x7 LB: > { %s1508_s23 = sadd.s32 4294967295, %s1834_s22   ;;  %s1509_s24 = sadd.s32 4294967294, %s1834_s22   ;;  %s1834_s22 = sphi %s1907_s22, %s24_s22   ;;  %s1830_s21 = sphi %s1905_s21, %s2587_s21   ;;  %s1826_s20 = sphi %s1903_s20, %s2586_s20   ;;  %s1822_s19 = sphi %s1901_s19, %s2585_s19   ;;  %s1818_s18 = sphi %s1899_s18, %s2584_s18   ;;  %s1814_s17 = sphi %s1897_s17, %s2583_s17  }
   0x8   : > { %s36_s25 = sadd.s32 1, %s1830_s21  ;;  %s283_s26 = sadd.s32 1, %s1822_s19 }
   0x9   : > { %p38_p0 = scmp.ge.s32.totalorder %s36_s25, 2  ;;  %p293_p1 = scmp.ne.s32.totalorder %s1822_s19, %s1818_s18 }
   0xa   : > { %p294_p2 = scmp.eq.s32.totalorder %s1508_s23, 1  ;;  %p299_p3 = scmp.ne.s32.totalorder %s1818_s18, %s1814_s17 }
   0xb   : > { %s2589_s25 = smov (%p38_p0, %s36_s25), 0  ;;  %p300_p5 = scmp.eq.s32.totalorder %s1509_s24, 1 }
   0xc   : > { %p1937_p4 = por %p294_p2, %p293_p1  ;;  %s278_s28 = ssub.s32 %s1830_s21, %s2589_s25 }
   0xd   : > { %p1512_p6 = scmp.ge.s32.totalorder %s1834_s22, 1  ;;  %p281_p7 = scmp.eq.s32.totalorder %s278_s28, 0 }
   0xe   : > { %p1944_p8 = por %p300_p5, %p299_p3  ;;  %p361_p9 = scmp.lt.s32.totalorder %s1834_s22, 3 }
   0xf   : > { %s1950_s30 = scalar_select %p281_p7, %s1822_s19, %s283_s26  }
  0x10   : > { %p362_p10 = pnand %p1512_p6, %p361_p9 }
  0x11   : > { %p406_p11 = scmp.lt.s32.totalorder (!%p362_p10), %s1826_s20, 1  ;;  %s2581_s0 = sld [smem:[#allocation5_spill]] (!%p362_p10) }
  0x12   : > { %365 = sbr.rel (%p362_p10) target bundleno = 1109 (0x455), region = 64  ;;  %s2582_s1 = sld [smem:[#allocation6_spill]] (!%p362_p10) }
  0x13   : > { %s1776_s14 = scalar_lea.hbm (!%p362_p10), %s2576_s11, 4 }
  0x17   : > { %s407_s12 = scalar_select %p406_p11, %s1826_s20, 1  ;;  %vm529_vm0 = vcmask 261120   ;;  %v465_v50 = vld [vmem:[%s2567_s2 + $0xe0] sm:$0xff]  ;;  %v466_v51 = vld [vmem:[%s2567_s2 + $0xe8] sm:$0xff]  ;;  %v463_v52 = vld [vmem:[%s2567_s2 + $0xd0] sm:$0xff]  ;;  %vm1407_vm1 = vcmask 1040384  }
  0x18   : > { %v1669_v12 = vld [vmem:[%s2582_s1] sm:$0xff]  ;;  %v1670_v13 = vld [vmem:[%s2582_s1 + $0x8] sm:$0xff]  ;;  %v1671_v14 = vld [vmem:[%s2582_s1 + $0x10] sm:$0xff] }
  0x19   : > { %s1664_s13 = sshll.u32 %s407_s12, 5  ;;  %v1672_v15 = vld [vmem:[%s2582_s1 + $0x18] sm:$0xff]  ;;  %v1673_v16 = vld [vmem:[%s2582_s1 + $0x20] sm:$0xff]  ;;  %v1674_v17 = vld [vmem:[%s2582_s1 + $0x28] sm:$0xff] }
  0x1a   : > { %s413_s16 = scalar_lea.vmem %s2581_s0, %s1664_s13  ;;  %v1675_v18 = vld [vmem:[%s2582_s1 + $0x30] sm:$0xff]  ;;  %v1676_v19 = vld [vmem:[%s2582_s1 + $0x38] sm:$0xff]  ;;  %v461_v57 = vld [vmem:[%s2567_s2 + $0xc0] sm:$0xff]  ;;  %s402_s0 = sand.u32 1, %s1818_s18  }
  0x1b   : > { %v1558_v0 = vld [vmem:[%s413_s16 + $0x10] sm:$0xf]  ;;  %v1668_v1 = vld [vmem:[%s413_s16 + $0x14] sm:$0xf0]  ;;  %v1667_v2 = vld [vmem:[%s413_s16 + $0x14] sm:$0xf] }
  0x1c   : > { %v1559_v3 = vor.u32 %v1668_v1, %v1558_v0  ;;  %v1560_v4 = vld [vmem:[%s413_s16 + $0x18] sm:$0xf0]  ;;  %v1550_v5 = vld [vmem:[%s413_s16] sm:$0xf]  ;;  %v1666_v6 = vld [vmem:[%s413_s16 + $0x4] sm:$0xf0] }
  0x1d   : > { %v1563_v7 = vor.u32 %v1667_v2, %v1560_v4  ;;  %v1665_v8 = vld [vmem:[%s413_s16 + $0x4] sm:$0xf]  ;;  %v1552_v9 = vld [vmem:[%s413_s16 + $0x8] sm:$0xf0]  ;;  %v1551_v10 = vor.u32 %v1666_v6, %v1550_v5  ;;  %v467_v53 = vld [vmem:[%s2567_s2 + $0xf0] sm:$0xff]  ;;  %s1513_s12 = sshll.u32 %s402_s0, 1 }
  0x1e   : > { %560 = vmatpush.bf16.msra.mxu0 %v1559_v3  ;;  %v1555_v11 = vor.u32 %v1665_v8, %v1552_v9  ;;  %v464_v54 = vld [vmem:[%s2567_s2 + $0xd8] sm:$0xff]  ;;  %v462_v60 = vld [vmem:[%s2567_s2 + $0xc8] sm:$0xff]  ;;  %v459_v0 = vld [vmem:[%s2567_s2 + $0xb0] sm:$0xff]  ;;  %s1661_s13 = sshll.u32 %s1826_s20, 1  ;;  %s404_s23 = scalar_lea.vmem [#allocation2], %s1513_s12 }
  0x1f   : > { %609 = vmatpush.bf16.msra.mxu1 %v1563_v7  ;;  %v468_v56 = vld [vmem:[%s2567_s2 + $0xf8] sm:$0xff]  ;;  %v457_v7 = vld [vmem:[%s2567_s2 + $0xa0] sm:$0xff]  ;;  %s1428_s16 = scalar_lea.hbm %s2576_s11, %s1661_s13  ;;  %s1430_s24 = sshll.u32 %s404_s23, 4  ;;  %s1431_s24 = int_to_ptr.vmem [resolvable:$true] %s1430_s24 }
  0x20   : > { %v460_v3 = vld [vmem:[%s2567_s2 + $0xb8] sm:$0xff]  ;;  %s1432_s26 = sshll.u32 %s1428_s16, 4  ;;  %s1416_s20 = scalar_lea.sflag [#allocation3], %s402_s0  ;;  %s1433_s26 = int_to_ptr.hbm [resolvable:$true] %s1432_s26 }
  0x21   : > { %s1770_s28 = sshra.s32 %s1433_s26, 4  ;;  %s1771_s28 = int_to_ptr.hbm [resolvable:$true] %s1770_s28 }
  0x22   : > { %561 = vmatpush.bf16.msra.mxu0 %v1551_v10  ;;  %s1772_s1 = scalar_lea.hbm %s1771_s28, 2  ;;  %p1777_p1 = scmp.lt.s32.totalorder %s1771_s28, %s2576_s11 }
  0x23   : > { %610 = vmatpush.bf16.msra.mxu1 %v1555_v11  ;;  %v458_v11 = vld [vmem:[%s2567_s2 + $0xa8] sm:$0xff]  ;;  %p1773_p12 = scmp.ne.s32.totalorder %s1771_s28, %s1772_s1  ;;  %p1778_p2 = scmp.lt.s32.totalorder %s1776_s14, %s1772_s1 }
  0x25   : > { %1564 = vmatmul.msk.bf16.vlgmr.msra.gmra.mxu0 %vm529_vm0, %v1669_v12  ;;  %p1774_p13 = pnand %p1773_p12, %p1937_p4  ;;  %p1779_p3 = por %p1778_p2, %p1777_p1 }
  0x26   : > { %1572 = vmatmul.msk.bf16.vlgmr.msra.gmra.mxu1 %vm529_vm0, %v1669_v12 }
  0x27   : > { %p1775_p0 = pneg %p1774_p13 }
  0x29   : > { %p1780_p5 = pnand %p1779_p3, %p1775_p0 }
  0x35   : > { %1565 = vmatmul.msk.bf16.gmra.mxu0 %vm529_vm0, %v1670_v13 }
  0x36   : > { %1573 = vmatmul.msk.bf16.gmra.mxu1 %vm529_vm0, %v1670_v13 }
  0x45   : > { %1566 = vmatmul.msk.bf16.gmra.mxu0 %vm529_vm0, %v1671_v14 }
  0x46   : > { %1574 = vmatmul.msk.bf16.gmra.mxu1 %vm529_vm0, %v1671_v14 }
  0x55   : > { %1567 = vmatmul.msk.bf16.gmra.mxu0 %vm529_vm0, %v1672_v15 }
  0x56   : > { %1575 = vmatmul.msk.bf16.gmra.mxu1 %vm529_vm0, %v1672_v15  ;;  %v455_v15 = vld [vmem:[%s2567_s2 + $0x90] sm:$0xff] }
  0x65   : > { %1568 = vmatmul.msk.bf16.gmra.mxu0 %vm529_vm0, %v1673_v16 }
  0x66   : > { %1576 = vmatmul.msk.bf16.gmra.mxu1 %vm529_vm0, %v1673_v16 }
  0x75   : > { %1569 = vmatmul.msk.bf16.gmra.mxu0 %vm529_vm0, %v1674_v17 }
  0x76   : > { %1577 = vmatmul.msk.bf16.gmra.mxu1 %vm529_vm0, %v1674_v17 }
  0x85   : > { %1570 = vmatmul.msk.bf16.gmra.mxu0 %vm529_vm0, %v1675_v18 }
  0x86   : > { %1578 = vmatmul.msk.bf16.gmra.mxu1 %vm529_vm0, %v1675_v18 }
  0x95   : > { %1571 = vmatmul.msk.bf16.gmra.mxu0 %vm529_vm0, %v1676_v19 }
  0x96   : > { %1579 = vmatmul.msk.bf16.gmra.mxu1 %vm529_vm0, %v1676_v19  ;;  %v456_v19 = vld [vmem:[%s2567_s2 + $0x98] sm:$0xff] }
  0xa2   : > { %v1997_v20 = vpop.f32.mrf.mxu0 }
  0xa3   : > { %v1999_v21 = vpop.f32.mrf.mxu1 }
  0xaa   : > { %v2001_v22 = vpop.f32.mrf.mxu0 }
  0xab   : > { %v2003_v23 = vpop.f32.mrf.mxu1 }
  0xb2   : > { %v2005_v24 = vpop.f32.mrf.mxu0 }
  0xb3   : > { %v2007_v25 = vpop.f32.mrf.mxu1 }
  0xba   : > { %v2009_v26 = vpop.f32.mrf.mxu0 }
  0xbb   : > { %v2011_v27 = vpop.f32.mrf.mxu1 }
  0xc2   : > { %v2013_v28 = vpop.f32.mrf.mxu0 }
  0xc3   : > { %v2015_v29 = vpop.f32.mrf.mxu1 }
  0xca   : > { %v2017_v30 = vpop.f32.mrf.mxu0 }
  0xcb   : > { %v2019_v31 = vpop.f32.mrf.mxu1 }
  0xd2   : > { %v2021_v32 = vpop.f32.mrf.mxu0 }
  0xd3   : > { %v2023_v33 = vpop.f32.mrf.mxu1 }
  0xda   : > { %v2025_v34 = vpop.f32.mrf.mxu0 }
  0xdb   : > { %v2027_v35 = vpop.f32.mrf.mxu1 }
  0xe2   : > { %v2029_v36 = vpop.f32.mrf.mxu0 }
  0xe3   : > { %v2031_v37 = vpop.f32.mrf.mxu1 }
  0xea   : > { %v585_v38 = vpop.f32.mrf.mxu0 }
  0xeb   : > { %v634_v39 = vpop.f32.mrf.mxu1 }
  0xf2   : > { %v588_v40 = vpop.f32.mrf.mxu0 }
  0xf3   : > { %v637_v41 = vpop.f32.mrf.mxu1 }
  0xfa   : > { %v590_v42 = vpop.f32.mrf.mxu0 }
  0xfb   : > { %v639_v43 = vpop.f32.mrf.mxu1  ;;  %v591_v12 = vadd.f32 %v590_v42, %v459_v0  ;;  %v453_v42 = vld [vmem:[%s2567_s2 + $0x80] sm:$0xff] }
  0xfc   : > { %v640_v16 = vadd.f32 %v639_v43, %v460_v3  ;;  %v454_v43 = vld [vmem:[%s2567_s2 + $0x88] sm:$0xff] }
 0x102   : > { %v593_v44 = vpop.f32.mrf.mxu0 }
 0x103   : > { %v642_v45 = vpop.f32.mrf.mxu1  ;;  %v594_v4 = vadd.f32 %v593_v44, %v461_v57  ;;  %v589_v44 = vadd.f32 %v588_v40, %v457_v7  ;;  %v451_v40 = vld [vmem:[%s2567_s2 + $0x70] sm:$0xff] }
 0x104   : > { %v643_v8 = vadd.f32 %v642_v45, %v462_v60 }
 0x105   : > { %v676_v45 = vmax.f32 %v594_v4, 0.0 }
 0x10a   : > { %v595_v46 = vpop.f32.mrf.mxu0 }
 0x10b   : > { %v644_v47 = vpop.f32.mrf.mxu1  ;;  %v596_v61 = vadd.f32 %v595_v46, %v463_v52  ;;  %v638_v46 = vadd.f32 %v637_v41, %v458_v11  ;;  %v675_v52 = vmax.f32 %v640_v16, 0.0  ;;  %v452_v41 = vld [vmem:[%s2567_s2 + $0x78] sm:$0xff] }
 0x10c   : > { %v645_v1 = vadd.f32 %v644_v47, %v464_v54  ;;  %v677_v47 = vmax.f32 %v643_v8, 0.0  ;;  %v584_v54 = vadd.f32 %v2029_v36, %v453_v42  ;;  %v447_v36 = vld [vmem:[%s2567_s2 + $0x50] sm:$0xff] }
 0x10d   : > { %v678_v13 = vmax.f32 %v596_v61, 0.0  ;;  %v673_v57 = vmax.f32 %v638_v46, 0.0  ;;  %v630_v61 = vadd.f32 %v2027_v35, %v452_v41  ;;  %v446_v35 = vld [vmem:[%s2567_s2 + $0x48] sm:$0xff]  ;;  %v576_v4 = vadd.f32 %v2017_v30, %v447_v36  ;;  %v441_v30 = vld [vmem:[%s2567_s2 + $0x20] sm:$0xff]  ;;  %v1684_v36 = vld [vmem:[%s2568_s3 + $0x38] sm:$0xff] }
 0x10e   : > { %v679_v17 = vmax.f32 %v645_v1, 0.0  ;;  %v668_v1 = vmax.f32 %v584_v54, 0.0 }
 0x10f   : > { %v667_v8 = vmax.f32 %v630_v61, 0.0 }
 0x112   : > { %v598_v48 = vpop.f32.mrf.mxu0 }
 0x113   : > { %v647_v49 = vpop.f32.mrf.mxu1  ;;  %v599_v55 = vadd.f32 %v598_v48, %v465_v50  ;;  %v586_v48 = vadd.f32 %v585_v38, %v455_v15  ;;  %v696_v50 = vpack.c.bf16 %v678_v13, %v676_v45  ;;  %v449_v38 = vld [vmem:[%s2567_s2 + $0x60] sm:$0xff]  ;;  %v662_v15 = vmax.f32 %v576_v4, 0.0 }
 0x114   : > { %v648_v58 = vadd.f32 %v647_v49, %v466_v51  ;;  %v674_v49 = vmax.f32 %v591_v12, 0.0  ;;  %v635_v51 = vadd.f32 %v634_v39, %v456_v19  ;;  %v450_v39 = vld [vmem:[%s2567_s2 + $0x68] sm:$0xff]  ;;  %v579_v0 = vadd.f32 %v2021_v32, %v449_v38  ;;  %v443_v32 = vld [vmem:[%s2567_s2 + $0x30] sm:$0xff] }
 0x115   : > { %v680_v5 = vmax.f32 %v599_v55, 0.0  ;;  %v672_v55 = vmax.f32 %v589_v44, 0.0  ;;  %v623_v12 = vadd.f32 %v2015_v29, %v446_v35  ;;  %v440_v29 = vld [vmem:[%s2567_s2 + $0x18] sm:$0xff]  ;;  %v569_v44 = vadd.f32 %v2005_v24, %v441_v30  ;;  %v720_v30 = vld [vmem:[%s2569_s4 + $0x20] sm:$0xff] }
 0x116   : > { %v681_v9 = vmax.f32 %v648_v58, 0.0  ;;  %v581_v58 = vadd.f32 %v2025_v34, %v451_v40  ;;  %v445_v34 = vld [vmem:[%s2567_s2 + $0x40] sm:$0xff]  ;;  %v664_v11 = vmax.f32 %v579_v0, 0.0  ;;  %v615_v24 = vadd.f32 %v2003_v23, %v440_v29  ;;  %v718_v0 = vld [vmem:[%s2569_s4 + $0x10] sm:$0xff] }
 0x117   : > { %v694_v60 = vpack.c.bf16 %v674_v49, %v672_v55  ;;  %v661_v46 = vmax.f32 %v623_v12, 0.0  ;;  %v721_v12 = vld [vmem:[%s2569_s4 + $0x28] sm:$0xff] }
 0x118   : > { %v655_v54 = vmax.f32 %v615_v24, 0.0 }
 0x11a   : > { %v600_v59 = vpop.f32.mrf.mxu0 }
 0x11b   : > { %v601_v62 = vadd.f32 %v600_v59, %v467_v53  ;;  %v649_v63 = vpop.f32.mrf.mxu1  ;;  %v697_v53 = vpack.c.bf16 %v679_v17, %v677_v47  ;;  %v670_v59 = vmax.f32 %v586_v48, 0.0 }
 0x11c   : > { %v650_v2 = vadd.f32 %v649_v63, %v468_v56  ;;  %v633_v56 = vadd.f32 %v2031_v37, %v454_v43  ;;  %v695_v63 = vpack.c.bf16 %v675_v52, %v673_v57  ;;  %v448_v37 = vld [vmem:[%s2567_s2 + $0x58] sm:$0xff]  ;;  %v1679_v57 = vld [vmem:[%s2568_s3 + $0x10] sm:$0xff] }
 0x11d   : > { %v682_v6 = vmax.f32 %v601_v62, 0.0  ;;  %v671_v62 = vmax.f32 %v635_v51, 0.0  ;;  %v625_v7 = vadd.f32 %v2019_v31, %v448_v37  ;;  %v442_v31 = vld [vmem:[%s2567_s2 + $0x28] sm:$0xff]  ;;  %v656_v51 = vmax.f32 %v569_v44, 0.0 }
 0x11e   : > { %v683_v10 = vmax.f32 %v650_v2, 0.0  ;;  %v628_v2 = vadd.f32 %v2023_v33, %v450_v39  ;;  %v669_v3 = vmax.f32 %v633_v56, 0.0  ;;  %v444_v33 = vld [vmem:[%s2567_s2 + $0x38] sm:$0xff]  ;;  %v618_v42 = vadd.f32 %v2007_v25, %v442_v31  ;;  %v717_v37 = vld [vmem:[%s2569_s4 + $0x8] sm:$0xff] }
 0x11f   : > { %v698_v14 = vpack.c.bf16 %v682_v6, %v680_v5  ;;  %v666_v5 = vmax.f32 %v581_v58, 0.0  ;;  %v692_v6 = vpack.c.bf16 %v670_v59, %v668_v1  ;;  %v620_v17 = vadd.f32 %v2011_v27, %v444_v33  ;;  %v438_v27 = vld [vmem:[%s2567_s2 + $0x8] sm:$0xff]  ;;  %v1680_v39 = vld [vmem:[%s2568_s3 + $0x18] sm:$0xff]  ;;  %v1681_v58 = vld [vmem:[%s2568_s3 + $0x20] sm:$0xff] }
 0x120   : > { %v699_v18 = vpack.c.bf16 %v683_v10, %v681_v9  ;;  %v693_v9 = vpack.c.bf16 %v671_v62, %v669_v3  ;;  %v574_v10 = vadd.f32 %v2013_v28, %v445_v34  ;;  %v665_v13 = vmax.f32 %v628_v2, 0.0  ;;  %v439_v28 = vld [vmem:[%s2567_s2 + $0x10] sm:$0xff]  ;;  %v1682_v59 = vld [vmem:[%s2568_s3 + $0x28] sm:$0xff]  ;;  %v719_v34 = vld [vmem:[%s2569_s4 + $0x18] sm:$0xff] }
 0x121   : > { %796 = vmatpush.bf16.msra.mxu2 %v698_v14  ;;  %v571_v14 = vadd.f32 %v2009_v26, %v443_v32  ;;  %v690_v16 = vpack.c.bf16 %v666_v5, %v664_v11  ;;  %v437_v26 = vld [vmem:[%s2567_s2] sm:$0xff]  ;;  %v566_v47 = vadd.f32 %v2001_v22, %v439_v28  ;;  %v659_v49 = vmax.f32 %v620_v17, 0.0 }
 0x122   : > { %845 = vmatpush.bf16.msra.mxu3 %v699_v18  ;;  %v663_v18 = vmax.f32 %v625_v7, 0.0  ;;  %v691_v19 = vpack.c.bf16 %v667_v8, %v665_v13  ;;  %v660_v45 = vmax.f32 %v574_v10, 0.0  ;;  %v564_v40 = vadd.f32 %v1997_v20, %v437_v26  ;;  %v1677_v20 = vld [vmem:[%s2568_s3] sm:$0xff]  ;;  %v722_v13 = vld [vmem:[%s2569_s4 + $0x30] sm:$0xff] }
 0x123   : > { %v658_v43 = vmax.f32 %v571_v14, 0.0  ;;  %v613_v25 = vadd.f32 %v1999_v21, %v438_v27  ;;  %v657_v52 = vmax.f32 %v618_v42, 0.0  ;;  %v1678_v21 = vld [vmem:[%s2568_s3 + $0x8] sm:$0xff]  ;;  %v723_v14 = vld [vmem:[%s2569_s4 + $0x38] sm:$0xff] }
 0x124   : > { %v688_v48 = vpack.c.bf16 %v662_v15, %v660_v45  ;;  %v652_v38 = vmax.f32 %v564_v40, 0.0 }
 0x125   : > { %797 = vmatpush.bf16.msra.mxu2 %v696_v50  ;;  %v689_v50 = vpack.c.bf16 %v663_v18, %v661_v46  ;;  %v686_v41 = vpack.c.bf16 %v658_v43, %v656_v51  ;;  %v687_v55 = vpack.c.bf16 %v659_v49, %v657_v52  ;;  %v653_v22 = vmax.f32 %v613_v25, 0.0  ;;  %v725_v43 = vld [vmem:[%s2569_s4 + $0x48] sm:$0xff]  ;;  %v727_v49 = vld [vmem:[%s2569_s4 + $0x58] sm:$0xff] }
 0x126   : > { %846 = vmatpush.bf16.msra.mxu3 %v697_v53  ;;  %v654_v53 = vmax.f32 %v566_v47, 0.0  ;;  %v724_v47 = vld [vmem:[%s2569_s4 + $0x40] sm:$0xff] }
 0x127   : > { %v685_v23 = vpack.c.bf16 %v655_v54, %v653_v22 }
 0x128   : > { %v684_v56 = vpack.c.bf16 %v654_v53, %v652_v38 }
 0x129   : > { %798 = vmatpush.bf16.msra.mxu2 %v694_v60  ;;  %v1683_v60 = vld [vmem:[%s2568_s3 + $0x30] sm:$0xff] }
 0x12a   : > { %847 = vmatpush.bf16.msra.mxu3 %v695_v63  ;;  %v716_v63 = vld [vmem:[%s2569_s4] sm:$0xff] }
 0x12d   : > { %799 = vmatpush.bf16.msra.mxu2 %v692_v6 }
 0x12e   : > { %848 = vmatpush.bf16.msra.mxu3 %v693_v9 }
 0x131   : > { %800 = vmatpush.bf16.msra.mxu2 %v690_v16 }
 0x132   : > { %849 = vmatpush.bf16.msra.mxu3 %v691_v19 }
 0x135   : > { %801 = vmatpush.bf16.msra.mxu2 %v688_v48  ;;  %v726_v48 = vld [vmem:[%s2569_s4 + $0x50] sm:$0xff] }
 0x136   : > { %850 = vmatpush.bf16.msra.mxu3 %v689_v50 }
 0x139   : > { %802 = vmatpush.bf16.msra.mxu2 %v686_v41 }
 0x13a   : > { %851 = vmatpush.bf16.msra.mxu3 %v687_v55 }
 0x13d   : > { %803 = vmatpush.bf16.msra.mxu2 %v684_v56 }
 0x13e   : > { %852 = vmatpush.bf16.msra.mxu3 %v685_v23 }
 0x140   : > { %804 = vmatmul.bf16.vlgmr.msra.gmra.mxu2 %v1677_v20 }
 0x141   : > { %853 = vmatmul.bf16.vlgmr.msra.gmra.mxu3 %v1677_v20  ;;  %v728_v20 = vld [vmem:[%s2569_s4 + $0x60] sm:$0xff] }
 0x150   : > { %809 = vmatmul.bf16.gmra.mxu2 %v1678_v21 }
 0x151   : > { %858 = vmatmul.bf16.gmra.mxu3 %v1678_v21  ;;  %v729_v21 = vld [vmem:[%s2569_s4 + $0x68] sm:$0xff] }
 0x160   : > { %814 = vmatmul.bf16.gmra.mxu2 %v1679_v57 }
 0x161   : > { %863 = vmatmul.bf16.gmra.mxu3 %v1679_v57  ;;  %v730_v57 = vld [vmem:[%s2569_s4 + $0x70] sm:$0xff] }
 0x170   : > { %819 = vmatmul.bf16.gmra.mxu2 %v1680_v39 }
 0x171   : > { %868 = vmatmul.bf16.gmra.mxu3 %v1680_v39 }
 0x180   : > { %824 = vmatmul.bf16.gmra.mxu2 %v1681_v58 }
 0x181   : > { %873 = vmatmul.bf16.gmra.mxu3 %v1681_v58  ;;  %v731_v58 = vld [vmem:[%s2569_s4 + $0x78] sm:$0xff] }
 0x190   : > { %829 = vmatmul.bf16.gmra.mxu2 %v1682_v59 }
 0x191   : > { %878 = vmatmul.bf16.gmra.mxu3 %v1682_v59 }
 0x1a0   : > { %834 = vmatmul.bf16.gmra.mxu2 %v1683_v60 }
 0x1a1   : > { %883 = vmatmul.bf16.gmra.mxu3 %v1683_v60 }
 0x1b0   : > { %839 = vmatmul.bf16.gmra.mxu2 %v1684_v36 }
 0x1b1   : > { %888 = vmatmul.bf16.gmra.mxu3 %v1684_v36 }
 0x1c3   : > { %v805_v61 = vpop.f32.mrf.mxu2 }
 0x1c4   : > { %v854_v62 = vpop.f32.mrf.mxu3  ;;  %v806_v1 = vadd.f32 %v805_v61, %v716_v63 }
 0x1c5   : > { %v855_v2 = vadd.f32 %v854_v62, %v717_v37 }
 0x1c6   : > { %v894_v6 = vmax.f32 %v806_v1, 0.0 }
 0x1c7   : > { %v895_v7 = vmax.f32 %v855_v2, 0.0 }
 0x1cb   : > { %v807_v3 = vpop.f32.mrf.mxu2 }
 0x1cc   : > { %v808_v35 = vadd.f32 %v807_v3, %v718_v0  ;;  %v856_v4 = vpop.f32.mrf.mxu3 }
 0x1cd   : > { %v857_v5 = vadd.f32 %v856_v4, %v719_v34 }
 0x1ce   : > { %v896_v32 = vmax.f32 %v808_v35, 0.0 }
 0x1cf   : > { %v897_v8 = vmax.f32 %v857_v5, 0.0 }
 0x1d0   : > { %v2183_v9 = vpack.c.bf16 %v896_v32, %v894_v6 }
 0x1d1   : > { %v2185_v33 = vpack.c.bf16 %v897_v8, %v895_v7 }
 0x1d3   : > { %v810_v10 = vpop.f32.mrf.mxu2 }
 0x1d4   : > { %v859_v11 = vpop.f32.mrf.mxu3  ;;  %v811_v31 = vadd.f32 %v810_v10, %v720_v30 }
 0x1d5   : > { %v860_v15 = vadd.f32 %v859_v11, %v721_v12 }
 0x1d6   : > { %v898_v19 = vmax.f32 %v811_v31, 0.0 }
 0x1d7   : > { %v899_v44 = vmax.f32 %v860_v15, 0.0  ;;  %v745_v15 = vld [vmem:[%s2569_s4 + $0xe8] sm:$0xff] }
 0x1db   : > { %v812_v16 = vpop.f32.mrf.mxu2 }
 0x1dc   : > { %v813_v28 = vadd.f32 %v812_v16, %v722_v13  ;;  %v861_v17 = vpop.f32.mrf.mxu3  ;;  %v742_v16 = vld [vmem:[%s2569_s4 + $0xd0] sm:$0xff] }
 0x1dd   : > { %v862_v18 = vadd.f32 %v861_v17, %v723_v14  ;;  %v744_v14 = vld [vmem:[%s2569_s4 + $0xe0] sm:$0xff]  ;;  %v743_v17 = vld [vmem:[%s2569_s4 + $0xd8] sm:$0xff] }
 0x1de   : > { %v900_v29 = vmax.f32 %v813_v28, 0.0  ;;  %v746_v28 = vld [vmem:[%s2569_s4 + $0xf0] sm:$0xff] }
 0x1df   : > { %v901_v45 = vmax.f32 %v862_v18, 0.0 }
 0x1e0   : > { %v2199_v26 = vpack.c.bf16 %v900_v29, %v898_v19  ;;  %v747_v19 = vld [vmem:[%s2569_s4 + $0xf8] sm:$0xff]  ;;  %v740_v29 = vld [vmem:[%s2569_s4 + $0xc0] sm:$0xff] }
 0x1e1   : > { %v2201_v42 = vpack.c.bf16 %v901_v45, %v899_v44 }
 0x1e3   : > { %v815_v46 = vpop.f32.mrf.mxu2 }
 0x1e4   : > { %v864_v27 = vpop.f32.mrf.mxu3  ;;  %v816_v24 = vadd.f32 %v815_v46, %v724_v47  ;;  %v741_v46 = vld [vmem:[%s2569_s4 + $0xc8] sm:$0xff] }
 0x1e5   : > { %v865_v50 = vadd.f32 %v864_v27, %v725_v43 }
 0x1e6   : > { %v902_v53 = vmax.f32 %v816_v24, 0.0 }
 0x1e7   : > { %v903_v54 = vmax.f32 %v865_v50, 0.0  ;;  %v739_v50 = vld [vmem:[%s2569_s4 + $0xb8] sm:$0xff] }
 0x1eb   : > { %v817_v40 = vpop.f32.mrf.mxu2 }
 0x1ec   : > { %v818_v51 = vadd.f32 %v817_v40, %v726_v48  ;;  %v866_v25 = vpop.f32.mrf.mxu3  ;;  %v738_v48 = vld [vmem:[%s2569_s4 + $0xb0] sm:$0xff] }
 0x1ed   : > { %v867_v52 = vadd.f32 %v866_v25, %v727_v49 }
 0x1ee   : > { %v904_v41 = vmax.f32 %v818_v51, 0.0 }
 0x1ef   : > { %v905_v55 = vmax.f32 %v867_v52, 0.0  ;;  %v736_v52 = vld [vmem:[%s2569_s4 + $0xa0] sm:$0xff] }
 0x1f0   : > { %v2215_v38 = vpack.c.bf16 %v904_v41, %v902_v53 }
 0x1f1   : > { %v2217_v22 = vpack.c.bf16 %v905_v55, %v903_v54  ;;  %v737_v55 = vld [vmem:[%s2569_s4 + $0xa8] sm:$0xff] }
 0x1f3   : > { %v820_v56 = vpop.f32.mrf.mxu2 }
 0x1f4   : > { %v869_v23 = vpop.f32.mrf.mxu3  ;;  %v821_v39 = vadd.f32 %v820_v56, %v728_v20 }
 0x1f5   : > { %v870_v59 = vadd.f32 %v869_v23, %v729_v21  ;;  %v734_v21 = vld [vmem:[%s2569_s4 + $0x90] sm:$0xff] }
 0x1f6   : > { %v906_v63 = vmax.f32 %v821_v39, 0.0 }
 0x1f7   : > { %v907_v0 = vmax.f32 %v870_v59, 0.0  ;;  %v735_v59 = vld [vmem:[%s2569_s4 + $0x98] sm:$0xff] }
 0x1fb   : > { %v822_v60 = vpop.f32.mrf.mxu2 }
 0x1fc   : > { %v823_v36 = vadd.f32 %v822_v60, %v730_v57  ;;  %v871_v61 = vpop.f32.mrf.mxu3 }
 0x1fd   : > { %v872_v62 = vadd.f32 %v871_v61, %v731_v58  ;;  %v732_v61 = vld [vmem:[%s2569_s4 + $0x80] sm:$0xff] }
 0x1fe   : > { %v908_v37 = vmax.f32 %v823_v36, 0.0 }
 0x1ff   : > { %v909_v1 = vmax.f32 %v872_v62, 0.0 }
 0x200   : > { %v2231_v34 = vpack.c.bf16 %v908_v37, %v906_v63  ;;  %v733_v37 = vld [vmem:[%s2569_s4 + $0x88] sm:$0xff] }
 0x201   : > { %v2233_v2 = vpack.c.bf16 %v909_v1, %v907_v0 }
 0x203   : > { %v825_v3 = vpop.f32.mrf.mxu2 }
 0x204   : > { %v2235_v35 = vpop.f32.mrf.mxu3 }
 0x20b   : > { %v827_v4 = vpop.f32.mrf.mxu2 }
 0x20c   : > { %v876_v5 = vpop.f32.mrf.mxu3  ;;  %v828_v0 = vadd.f32 %v827_v4, %v734_v21 }
 0x213   : > { %v830_v6 = vpop.f32.mrf.mxu2 }
 0x214   : > { %v879_v32 = vpop.f32.mrf.mxu3  ;;  %v831_v60 = vadd.f32 %v830_v6, %v736_v52  ;;  %v826_v6 = vadd.f32 %v825_v3, %v732_v61  ;;  %v1685_v3 = vld [vmem:[%s2570_s5] sm:$0xff] }
 0x215   : > { %v880_v62 = vadd.f32 %v879_v32, %v737_v55  ;;  %v912_v32 = vmax.f32 %v828_v0, 0.0  ;;  %v966_v0 = vld [vmem:[%s2571_s6 + $0x40] sm:$0xff] }
 0x21b   : > { %v832_v7 = vpop.f32.mrf.mxu2 }
 0x21c   : > { %v881_v8 = vpop.f32.mrf.mxu3  ;;  %v833_v56 = vadd.f32 %v832_v7, %v738_v48 }
 0x21d   : > { %v882_v57 = vadd.f32 %v881_v8, %v739_v50  ;;  %v877_v8 = vadd.f32 %v876_v5, %v735_v59  ;;  %v958_v5 = vld [vmem:[%s2571_s6] sm:$0xff] }
 0x21e   : > { %v916_v1 = vmax.f32 %v833_v56, 0.0  ;;  %v965_v56 = vld [vmem:[%s2571_s6 + $0x38] sm:$0xff] }
 0x223   : > { %v835_v10 = vpop.f32.mrf.mxu2 }
 0x224   : > { %v884_v11 = vpop.f32.mrf.mxu3  ;;  %v836_v40 = vadd.f32 %v835_v10, %v740_v29  ;;  %v917_v10 = vmax.f32 %v882_v57, 0.0 }
 0x225   : > { %v885_v53 = vadd.f32 %v884_v11, %v741_v46 }
 0x226   : > { %v918_v36 = vmax.f32 %v836_v40, 0.0 }
 0x227   : > { %v919_v63 = vmax.f32 %v885_v53, 0.0  ;;  %v962_v53 = vld [vmem:[%s2571_s6 + $0x20] sm:$0xff] }
 0x22b   : > { %v837_v30 = vpop.f32.mrf.mxu2 }
 0x22c   : > { %v886_v12 = vpop.f32.mrf.mxu3  ;;  %v838_v27 = vadd.f32 %v837_v30, %v742_v16  ;;  %v914_v30 = vmax.f32 %v831_v60, 0.0  ;;  %v910_v16 = vmax.f32 %v826_v6, 0.0 }
 0x22d   : > { %v887_v24 = vadd.f32 %v886_v12, %v743_v17  ;;  %v875_v12 = vadd.f32 %v2235_v35, %v733_v37 }
 0x22e   : > { %v920_v23 = vmax.f32 %v838_v27, 0.0  ;;  %v934_v4 = vpack.c.bf16 %v912_v32, %v910_v16 }
 0x22f   : > { %v921_v39 = vmax.f32 %v887_v24, 0.0 }
 0x230   : > { %v938_v7 = vpack.c.bf16 %v920_v23, %v918_v36 }
 0x231   : > { %v939_v11 = vpack.c.bf16 %v921_v39, %v919_v63 }
 0x233   : > { %v840_v13 = vpop.f32.mrf.mxu2 }
 0x234   : > { %v889_v31 = vpop.f32.mrf.mxu3  ;;  %v841_v18 = vadd.f32 %v840_v13, %v744_v14  ;;  %v915_v13 = vmax.f32 %v880_v62, 0.0  ;;  %v913_v14 = vmax.f32 %v877_v8, 0.0 }
 0x235   : > { %v890_v44 = vadd.f32 %v889_v31, %v745_v15  ;;  %v936_v31 = vpack.c.bf16 %v916_v1, %v914_v30  ;;  %v967_v1 = vld [vmem:[%s2571_s6 + $0x48] sm:$0xff] }
 0x236   : > { %v922_v51 = vmax.f32 %v841_v18, 0.0  ;;  %v937_v15 = vpack.c.bf16 %v917_v10, %v915_v13  ;;  %v959_v18 = vld [vmem:[%s2571_s6 + $0x8] sm:$0xff]  ;;  %v969_v10 = vld [vmem:[%s2571_s6 + $0x58] sm:$0xff] }
 0x237   : > { %v923_v41 = vmax.f32 %v890_v44, 0.0  ;;  %v961_v44 = vld [vmem:[%s2571_s6 + $0x18] sm:$0xff] }
 0x23b   : > { %v842_v45 = vpop.f32.mrf.mxu2 }
 0x23c   : > { %v843_v47 = vadd.f32 %v842_v45, %v746_v28  ;;  %v891_v43 = vpop.f32.mrf.mxu3  ;;  %v911_v28 = vmax.f32 %v875_v12, 0.0 }
 0x23d   : > { %v892_v49 = vadd.f32 %v891_v43, %v747_v19  ;;  %v960_v19 = vld [vmem:[%s2571_s6 + $0x10] sm:$0xff] }
 0x23e   : > { %v924_v25 = vmax.f32 %v843_v47, 0.0  ;;  %v935_v17 = vpack.c.bf16 %v913_v14, %v911_v28 }
 0x23f   : > { %v925_v54 = vmax.f32 %v892_v49, 0.0 }
 0x240   : > { %v940_v20 = vpack.c.bf16 %v924_v25, %v922_v51 }
 0x241   : > { %v941_v58 = vpack.c.bf16 %v925_v54, %v923_v41  ;;  %v963_v41 = vld [vmem:[%s2571_s6 + $0x28] sm:$0xff]  ;;  %v964_v54 = vld [vmem:[%s2571_s6 + $0x30] sm:$0xff] }
 0x242   : > { %1038 = vmatpush.bf16.msrb.mxu0 %v940_v20 }
 0x243   : > { %1087 = vmatpush.bf16.msrb.mxu1 %v941_v58 }
 0x246   : > { %1039 = vmatpush.bf16.msrb.mxu0 %v938_v7  ;;  %v968_v7 = vld [vmem:[%s2571_s6 + $0x50] sm:$0xff] }
 0x247   : > { %1088 = vmatpush.bf16.msrb.mxu1 %v939_v11 }
 0x24a   : > { %1040 = vmatpush.bf16.msrb.mxu0 %v936_v31 }
 0x24b   : > { %1089 = vmatpush.bf16.msrb.mxu1 %v937_v15 }
 0x24e   : > { %1041 = vmatpush.bf16.msrb.mxu0 %v934_v4 }
 0x24f   : > { %1090 = vmatpush.bf16.msrb.mxu1 %v935_v17 }
 0x252   : > { %1042 = vmatpush.bf16.msrb.mxu0 %v2231_v34  ;;  %v1692_v34 = vld [vmem:[%s2570_s5 + $0x38] sm:$0xff] }
 0x253   : > { %1091 = vmatpush.bf16.msrb.mxu1 %v2233_v2 }
 0x256   : > { %1043 = vmatpush.bf16.msrb.mxu0 %v2215_v38  ;;  %v1686_v38 = vld [vmem:[%s2570_s5 + $0x8] sm:$0xff] }
 0x257   : > { %1092 = vmatpush.bf16.msrb.mxu1 %v2217_v22  ;;  %v1691_v22 = vld [vmem:[%s2570_s5 + $0x30] sm:$0xff] }
 0x25a   : > { %1044 = vmatpush.bf16.msrb.mxu0 %v2199_v26  ;;  %v1687_v26 = vld [vmem:[%s2570_s5 + $0x10] sm:$0xff] }
 0x25b   : > { %1093 = vmatpush.bf16.msrb.mxu1 %v2201_v42  ;;  %v1690_v42 = vld [vmem:[%s2570_s5 + $0x28] sm:$0xff] }
 0x25e   : > { %1045 = vmatpush.bf16.msrb.mxu0 %v2183_v9  ;;  %v1688_v9 = vld [vmem:[%s2570_s5 + $0x18] sm:$0xff] }
 0x25f   : > { %1094 = vmatpush.bf16.msrb.mxu1 %v2185_v33  ;;  %v1689_v33 = vld [vmem:[%s2570_s5 + $0x20] sm:$0xff] }
 0x261   : > { %1046 = vmatmul.bf16.vlgmr.msrb.gmra.mxu0 %v1685_v3 }
 0x262   : > { %1095 = vmatmul.bf16.vlgmr.msrb.gmra.mxu1 %v1685_v3  ;;  %v970_v3 = vld [vmem:[%s2571_s6 + $0x60] sm:$0xff] }
 0x271   : > { %1051 = vmatmul.bf16.gmra.mxu0 %v1686_v38 }
 0x272   : > { %1100 = vmatmul.bf16.gmra.mxu1 %v1686_v38  ;;  %v971_v38 = vld [vmem:[%s2571_s6 + $0x68] sm:$0xff] }
 0x281   : > { %1056 = vmatmul.bf16.gmra.mxu0 %v1687_v26 }
 0x282   : > { %1105 = vmatmul.bf16.gmra.mxu1 %v1687_v26  ;;  %v972_v26 = vld [vmem:[%s2571_s6 + $0x70] sm:$0xff] }
 0x291   : > { %1061 = vmatmul.bf16.gmra.mxu0 %v1688_v9 }
 0x292   : > { %1110 = vmatmul.bf16.gmra.mxu1 %v1688_v9 }
 0x2a1   : > { %1066 = vmatmul.bf16.gmra.mxu0 %v1689_v33 }
 0x2a2   : > { %1115 = vmatmul.bf16.gmra.mxu1 %v1689_v33  ;;  %v973_v33 = vld [vmem:[%s2571_s6 + $0x78] sm:$0xff] }
 0x2b1   : > { %1071 = vmatmul.bf16.gmra.mxu0 %v1690_v42 }
 0x2b2   : > { %1120 = vmatmul.bf16.gmra.mxu1 %v1690_v42 }
 0x2c1   : > { %1076 = vmatmul.bf16.gmra.mxu0 %v1691_v22 }
 0x2c2   : > { %1125 = vmatmul.bf16.gmra.mxu1 %v1691_v22 }
 0x2d1   : > { %1081 = vmatmul.bf16.gmra.mxu0 %v1692_v34 }
 0x2d2   : > { %1130 = vmatmul.bf16.gmra.mxu1 %v1692_v34 }
 0x2de   : > { %v1047_v2 = vpop.f32.mrf.mxu0 }
 0x2df   : > { %v1096_v35 = vpop.f32.mrf.mxu1  ;;  %v1048_v29 = vadd.f32 %v1047_v2, %v958_v5 }
 0x2e0   : > { %v1097_v45 = vadd.f32 %v1096_v35, %v959_v18 }
 0x2e1   : > { %v1136_v48 = vmax.f32 %v1048_v29, 0.0 }
 0x2e2   : > { %v1137_v49 = vmax.f32 %v1097_v45, 0.0 }
 0x2e6   : > { %v1049_v46 = vpop.f32.mrf.mxu0 }
 0x2e7   : > { %v1050_v27 = vadd.f32 %v1049_v46, %v960_v19  ;;  %v1098_v47 = vpop.f32.mrf.mxu1 }
 0x2e8   : > { %v1099_v43 = vadd.f32 %v1098_v47, %v961_v44 }
 0x2e9   : > { %v1138_v24 = vmax.f32 %v1050_v27, 0.0 }
 0x2ea   : > { %v1139_v50 = vmax.f32 %v1099_v43, 0.0 }
 0x2eb   : > { %v2330_v40 = vpack.c.bf16 %v1138_v24, %v1136_v48 }
 0x2ec   : > { %v2332_v51 = vpack.c.bf16 %v1139_v50, %v1137_v49 }
 0x2ee   : > { %v1052_v25 = vpop.f32.mrf.mxu0 }
 0x2ef   : > { %v1101_v52 = vpop.f32.mrf.mxu1  ;;  %v1053_v55 = vadd.f32 %v1052_v25, %v962_v53 }
 0x2f0   : > { %v1102_v23 = vadd.f32 %v1101_v52, %v963_v41 }
 0x2f1   : > { %v1140_v58 = vmax.f32 %v1053_v55, 0.0 }
 0x2f2   : > { %v1141_v60 = vmax.f32 %v1102_v23, 0.0  ;;  %v987_v23 = vld [vmem:[%s2571_s6 + $0xe8] sm:$0xff] }
 0x2f6   : > { %v1054_v20 = vpop.f32.mrf.mxu0 }
 0x2f7   : > { %v1055_v21 = vadd.f32 %v1054_v20, %v964_v54  ;;  %v1103_v57 = vpop.f32.mrf.mxu1  ;;  %v984_v20 = vld [vmem:[%s2571_s6 + $0xd0] sm:$0xff] }
 0x2f8   : > { %v1104_v39 = vadd.f32 %v1103_v57, %v965_v56  ;;  %v986_v56 = vld [vmem:[%s2571_s6 + $0xe0] sm:$0xff]  ;;  %v985_v57 = vld [vmem:[%s2571_s6 + $0xd8] sm:$0xff] }
 0x2f9   : > { %v1142_v59 = vmax.f32 %v1055_v21, 0.0  ;;  %v988_v21 = vld [vmem:[%s2571_s6 + $0xf0] sm:$0xff] }
 0x2fa   : > { %v1143_v36 = vmax.f32 %v1104_v39, 0.0 }
 0x2fb   : > { %v2346_v61 = vpack.c.bf16 %v1142_v59, %v1140_v58  ;;  %v989_v58 = vld [vmem:[%s2571_s6 + $0xf8] sm:$0xff]  ;;  %v982_v59 = vld [vmem:[%s2571_s6 + $0xc0] sm:$0xff] }
 0x2fc   : > { %v2348_v62 = vpack.c.bf16 %v1143_v36, %v1141_v60 }
 0x2fe   : > { %v1057_v63 = vpop.f32.mrf.mxu0 }
 0x2ff   : > { %v1106_v37 = vpop.f32.mrf.mxu1  ;;  %v1058_v8 = vadd.f32 %v1057_v63, %v966_v0  ;;  %v983_v63 = vld [vmem:[%s2571_s6 + $0xc8] sm:$0xff] }
 0x300   : > { %v1107_v11 = vadd.f32 %v1106_v37, %v967_v1 }
 0x301   : > { %v1144_v32 = vmax.f32 %v1058_v8, 0.0 }
 0x302   : > { %v1145_v14 = vmax.f32 %v1107_v11, 0.0  ;;  %v981_v11 = vld [vmem:[%s2571_s6 + $0xb8] sm:$0xff] }
 0x306   : > { %v1059_v6 = vpop.f32.mrf.mxu0 }
 0x307   : > { %v1060_v30 = vadd.f32 %v1059_v6, %v968_v7  ;;  %v1108_v12 = vpop.f32.mrf.mxu1  ;;  %v980_v7 = vld [vmem:[%s2571_s6 + $0xb0] sm:$0xff] }
 0x308   : > { %v1109_v13 = vadd.f32 %v1108_v12, %v969_v10 }
 0x309   : > { %v1146_v31 = vmax.f32 %v1060_v30, 0.0 }
 0x30a   : > { %v1147_v15 = vmax.f32 %v1109_v13, 0.0  ;;  %v978_v13 = vld [vmem:[%s2571_s6 + $0xa0] sm:$0xff] }
 0x30b   : > { %v2362_v16 = vpack.c.bf16 %v1146_v31, %v1144_v32 }
 0x30c   : > { %v2364_v28 = vpack.c.bf16 %v1147_v15, %v1145_v14  ;;  %v979_v15 = vld [vmem:[%s2571_s6 + $0xa8] sm:$0xff] }
 0x30e   : > { %v1062_v4 = vpop.f32.mrf.mxu0 }
 0x30f   : > { %v1111_v17 = vpop.f32.mrf.mxu1  ;;  %v1063_v9 = vadd.f32 %v1062_v4, %v970_v3 }
 0x310   : > { %v1112_v42 = vadd.f32 %v1111_v17, %v971_v38  ;;  %v976_v38 = vld [vmem:[%s2571_s6 + $0x90] sm:$0xff] }
 0x311   : > { %v1148_v5 = vmax.f32 %v1063_v9, 0.0 }
 0x312   : > { %v1149_v19 = vmax.f32 %v1112_v42, 0.0  ;;  %v977_v42 = vld [vmem:[%s2571_s6 + $0x98] sm:$0xff] }
 0x316   : > { %v1064_v22 = vpop.f32.mrf.mxu0 }
 0x317   : > { %v1065_v34 = vadd.f32 %v1064_v22, %v972_v26  ;;  %v1113_v2 = vpop.f32.mrf.mxu1 }
 0x318   : > { %v1114_v35 = vadd.f32 %v1113_v2, %v973_v33  ;;  %v974_v2 = vld [vmem:[%s2571_s6 + $0x80] sm:$0xff] }
 0x319   : > { %v1150_v18 = vmax.f32 %v1065_v34, 0.0 }
 0x31a   : > { %v1151_v29 = vmax.f32 %v1114_v35, 0.0 }
 0x31b   : > { %v2378_v44 = vpack.c.bf16 %v1150_v18, %v1148_v5  ;;  %v975_v18 = vld [vmem:[%s2571_s6 + $0x88] sm:$0xff] }
 0x31c   : > { %v2380_v45 = vpack.c.bf16 %v1151_v29, %v1149_v19 }
 0x31e   : > { %v1067_v46 = vpop.f32.mrf.mxu0 }
 0x31f   : > { %v2382_v27 = vpop.f32.mrf.mxu1 }
 0x326   : > { %v1069_v47 = vpop.f32.mrf.mxu0 }
 0x327   : > { %v1118_v43 = vpop.f32.mrf.mxu1  ;;  %v1070_v19 = vadd.f32 %v1069_v47, %v976_v38 }
 0x32e   : > { %v1072_v48 = vpop.f32.mrf.mxu0 }
 0x32f   : > { %v1121_v24 = vpop.f32.mrf.mxu1  ;;  %v1073_v22 = vadd.f32 %v1072_v48, %v978_v13  ;;  %v1068_v48 = vadd.f32 %v1067_v46, %v974_v2  ;;  %v1836_v46 = vmov 0   ;;  %v1196_v13 = vld [vmem:[%s2573_s8 + $0x20] sm:$0xff] }
 0x330   : > { %v1122_v35 = vadd.f32 %v1121_v24, %v979_v15  ;;  %v1154_v24 = vmax.f32 %v1070_v19, 0.0  ;;  %1753 = vset.pattern.permute.xlu0 %v1836_v46  ;;  %1754 = vset.pattern.permute.xlu1 %v1836_v46  ;;  %v1197_v15 = vld [vmem:[%s2573_s8 + $0x28] sm:$0xff] }
 0x331   : > { %1755 = vset.pattern.permute.xlu2 %v1836_v46 }
 0x336   : > { %v1074_v49 = vpop.f32.mrf.mxu0 }
 0x337   : > { %v1123_v50 = vpop.f32.mrf.mxu1  ;;  %v1075_v4 = vadd.f32 %v1074_v49, %v980_v7 }
 0x338   : > { %v1124_v26 = vadd.f32 %v1123_v50, %v981_v11  ;;  %v1119_v50 = vadd.f32 %v1118_v43, %v977_v42  ;;  %v1311_v43 = vld [vmem:[%s2574_s9 + $0x28] sm:$0xff] }
 0x339   : > { %v1158_v29 = vmax.f32 %v1075_v4, 0.0 }
 0x33e   : > { %v1077_v25 = vpop.f32.mrf.mxu0 }
 0x33f   : > { %v1126_v52 = vpop.f32.mrf.mxu1  ;;  %v1078_v6 = vadd.f32 %v1077_v25, %v982_v59  ;;  %v1159_v25 = vmax.f32 %v1124_v26, 0.0 }
 0x340   : > { %v1127_v32 = vadd.f32 %v1126_v52, %v983_v63 }
 0x341   : > { %v1160_v34 = vmax.f32 %v1078_v6, 0.0  ;;  %v1194_v6 = vld [vmem:[%s2573_s8 + $0x10] sm:$0xff] }
 0x342   : > { %v1161_v5 = vmax.f32 %v1127_v32, 0.0 }
 0x346   : > { %v1079_v53 = vpop.f32.mrf.mxu0 }
 0x347   : > { %v1128_v41 = vpop.f32.mrf.mxu1  ;;  %v1080_v37 = vadd.f32 %v1079_v53, %v984_v20  ;;  %v1156_v53 = vmax.f32 %v1073_v22, 0.0  ;;  %v1152_v20 = vmax.f32 %v1068_v48, 0.0 }
 0x348   : > { %v1129_v8 = vadd.f32 %v1128_v41, %v985_v57  ;;  %v1117_v41 = vadd.f32 %v2382_v27, %v975_v18  ;;  %v1306_v27 = vld [vmem:[%s2574_s9] sm:$0xff]  ;;  %v1201_v18 = vld [vmem:[%s2573_s8 + $0x48] sm:$0xff] }
 0x349   : > { %v1162_v17 = vmax.f32 %v1080_v37, 0.0  ;;  %v1176_v47 = vpack.c.bf16 %v1154_v24, %v1152_v20  ;;  %1316 = vperm.xlu0 %1753, %v1306_v27  }
 0x34a   : > { %v1163_v9 = vmax.f32 %v1129_v8, 0.0 }
 0x34b   : > { %v1180_v49 = vpack.c.bf16 %v1162_v17, %v1160_v34  ;;  %v1198_v17 = vld [vmem:[%s2573_s8 + $0x30] sm:$0xff]  ;;  %v1200_v34 = vld [vmem:[%s2573_s8 + $0x40] sm:$0xff] }
 0x34c   : > { %v1181_v52 = vpack.c.bf16 %v1163_v9, %v1161_v5  ;;  %v1199_v9 = vld [vmem:[%s2573_s8 + $0x38] sm:$0xff] }
 0x34e   : > { %v1082_v54 = vpop.f32.mrf.mxu0 }
 0x34f   : > { %v1131_v55 = vpop.f32.mrf.mxu1  ;;  %v1083_v39 = vadd.f32 %v1082_v54, %v986_v56  ;;  %v1157_v54 = vmax.f32 %v1122_v35, 0.0  ;;  %v1155_v56 = vmax.f32 %v1119_v50, 0.0 }
 0x350   : > { %v1132_v60 = vadd.f32 %v1131_v55, %v987_v23  ;;  %v1178_v55 = vpack.c.bf16 %v1158_v29, %v1156_v53  ;;  %v1203_v53 = vld [vmem:[%s2573_s8 + $0x58] sm:$0xff] }
 0x351   : > { %v1164_v30 = vmax.f32 %v1083_v39, 0.0  ;;  %v1179_v23 = vpack.c.bf16 %v1159_v25, %v1157_v54  ;;  %v1695_v39 = vld [vmem:[%s2572_s7 + $0x10] sm:$0xff] }
 0x352   : > { %v1165_v31 = vmax.f32 %v1132_v60, 0.0 }
 0x356   : > { %v1084_v36 = vpop.f32.mrf.mxu0 }
 0x357   : > { %v1085_v0 = vadd.f32 %v1084_v36, %v988_v21  ;;  %v1133_v1 = vpop.f32.mrf.mxu1  ;;  %v1153_v21 = vmax.f32 %v1117_v41, 0.0 }
 0x358   : > { %v1134_v10 = vadd.f32 %v1133_v1, %v989_v58  ;;  %v1696_v58 = vld [vmem:[%s2572_s7 + $0x18] sm:$0xff] }
 0x359   : > { %v1166_v12 = vmax.f32 %v1085_v0, 0.0  ;;  %v1177_v57 = vpack.c.bf16 %v1155_v56, %v1153_v21  ;;  %v1205_v21 = vld [vmem:[%s2573_s8 + $0x68] sm:$0xff] }
 0x35a   : > { %v1167_v14 = vmax.f32 %v1134_v10, 0.0 }
 0x35b   : > { %v1182_v3 = vpack.c.bf16 %v1166_v12, %v1164_v30  ;;  %v1195_v30 = vld [vmem:[%s2573_s8 + $0x18] sm:$0xff]  ;;  %v1192_v12 = vld [vmem:[%s2573_s8] sm:$0xff] }
 0x35c   : > { %v1183_v33 = vpack.c.bf16 %v1167_v14, %v1165_v31  ;;  %v1193_v31 = vld [vmem:[%s2573_s8 + $0x8] sm:$0xff] }
 0x35d   : > { %1232 = vmatpush.bf16.msrb.mxu2 %v1182_v3 }
 0x35e   : > { %1261 = vmatpush.bf16.msrb.mxu3 %v1183_v33 }
 0x361   : > { %1233 = vmatpush.bf16.msrb.mxu2 %v1180_v49  ;;  %v1202_v49 = vld [vmem:[%s2573_s8 + $0x50] sm:$0xff] }
 0x362   : > { %1262 = vmatpush.bf16.msrb.mxu3 %v1181_v52 }
 0x365   : > { %1234 = vmatpush.bf16.msrb.mxu2 %v1178_v55  ;;  %v1204_v55 = vld [vmem:[%s2573_s8 + $0x60] sm:$0xff] }
 0x366   : > { %1263 = vmatpush.bf16.msrb.mxu3 %v1179_v23 }
 0x369   : > { %1235 = vmatpush.bf16.msrb.mxu2 %v1176_v47 }
 0x36a   : > { %1264 = vmatpush.bf16.msrb.mxu3 %v1177_v57 }
 0x36d   : > { %1236 = vmatpush.bf16.msrb.mxu2 %v2378_v44  ;;  %v1693_v44 = vld [vmem:[%s2572_s7] sm:$0xff] }
 0x36e   : > { %1265 = vmatpush.bf16.msrb.mxu3 %v2380_v45  ;;  %v1313_v45 = vld [vmem:[%s2574_s9 + $0x38] sm:$0xff] }
 0x371   : > { %1237 = vmatpush.bf16.msrb.mxu2 %v2362_v16  ;;  %v1307_v16 = vld [vmem:[%s2574_s9 + $0x8] sm:$0xff] }
 0x372   : > { %1266 = vmatpush.bf16.msrb.mxu3 %v2364_v28  ;;  %1321 = vperm.xlu0 %1753, %v1307_v16   ;;  %v1310_v28 = vld [vmem:[%s2574_s9 + $0x20] sm:$0xff] }
 0x373   : > { %1336 = vperm.xlu2 %1755, %v1310_v28  }
 0x375   : > { %1238 = vmatpush.bf16.msrb.mxu2 %v2346_v61  ;;  %v1308_v61 = vld [vmem:[%s2574_s9 + $0x10] sm:$0xff] }
 0x376   : > { %1267 = vmatpush.bf16.msrb.mxu3 %v2348_v62  ;;  %1326 = vperm.xlu1 %1754, %v1308_v61   ;;  %v1694_v62 = vld [vmem:[%s2572_s7 + $0x8] sm:$0xff] }
 0x379   : > { %1239 = vmatpush.bf16.msrb.mxu2 %v2330_v40  ;;  %v1309_v40 = vld [vmem:[%s2574_s9 + $0x18] sm:$0xff] }
 0x37a   : > { %1268 = vmatpush.bf16.msrb.mxu3 %v2332_v51  ;;  %v1312_v51 = vld [vmem:[%s2574_s9 + $0x30] sm:$0xff] }
 0x37b   : > { %1346 = vperm.xlu0 %1753, %v1312_v51   ;;  %1341 = vperm.xlu2 %1755, %v1311_v43  }
 0x37c   : > { %1240 = vmatmul.bf16.vlgmr.msrb.gmra.mxu2 %v1693_v44 }
 0x37d   : > { %1269 = vmatmul.bf16.vlgmr.msrb.gmra.mxu3 %v1693_v44 }
 0x37e   : > { %1331 = vperm.xlu1 %1754, %v1309_v40  }
 0x386   : > { %1351 = vperm.xlu1 %1754, %v1313_v45  }
 0x38c   : > { %1245 = vmatmul.bf16.gmra.mxu2 %v1694_v62 }
 0x38d   : > { %1274 = vmatmul.bf16.gmra.mxu3 %v1694_v62 }
 0x39c   : > { %1250 = vmatmul.bf16.gmra.mxu2 %v1695_v39 }
 0x39d   : > { %1279 = vmatmul.bf16.gmra.mxu3 %v1695_v39 }
 0x3ac   : > { %1255 = vmatmul.bf16.gmra.mxu2 %v1696_v58 }
 0x3ad   : > { %1284 = vmatmul.bf16.gmra.mxu3 %v1696_v58 }
 0x3bb   : > { %v1317_v11 = vpop.permute.xlu0 %1316 }
 0x3cd   : > { %v1337_v2 = vpop.permute.xlu2 %1336 }
 0x3e4   : > { %v1322_v50 = vpop.permute.xlu0 %1321 }
 0x3e8   : > { %v1327_v32 = vpop.permute.xlu1 %1326 }
 0x3f0   : > { %v1332_v44 = vpop.permute.xlu1 %1331 }
 0x3ff   : > { %v1241_v59 = vpop.f32.mrf.mxu2 }
 0x400   : > { %v1270_v60 = vpop.f32.mrf.mxu3  ;;  %v1242_v38 = vadd.f32 %v1241_v59, %v1192_v12  ;;  %v1206_v12 = vld [vmem:[%s2573_s8 + $0x70] sm:$0xff] }
 0x401   : > { %v1271_v42 = vadd.f32 %v1270_v60, %v1193_v31 }
 0x402   : > { %v1290_v25 = vmax.f32 %v1242_v38, 0.0 }
 0x403   : > { %v1291_v41 = vmax.f32 %v1271_v42, 0.0 }
 0x404   : > { %v1354_v61 = vmul.f32 %v1317_v11, %v1290_v25 }
 0x405   : > { %v1355_v45 = vmul.f32 %v1317_v11, %v1291_v41 }
 0x407   : > { %v1243_v36 = vpop.f32.mrf.mxu2 }
 0x408   : > { %v1272_v63 = vpop.f32.mrf.mxu3  ;;  %v1244_v14 = vadd.f32 %v1243_v36, %v1194_v6 }
 0x409   : > { %v1273_v4 = vadd.f32 %v1272_v63, %v1195_v30 }
 0x40a   : > { %v1292_v35 = vmax.f32 %v1244_v14, 0.0 }
 0x40b   : > { %v1293_v19 = vmax.f32 %v1273_v4, 0.0 }
 0x40c   : > { %v1356_v20 = vmul.f32 %v1322_v50, %v1292_v35 }
 0x40d   : > { %v1357_v46 = vmul.f32 %v1322_v50, %v1293_v19 }
 0x40e   : > { %v1370_v59 = vadd.f32 %v1356_v20, %v1354_v61 }
 0x40f   : > { %v1246_v37 = vpop.f32.mrf.mxu2  ;;  %v1383_v63 = vadd.f32 %v1357_v46, %v1355_v45 }
 0x410   : > { %v1275_v0 = vpop.f32.mrf.mxu3  ;;  %v1247_v26 = vadd.f32 %v1246_v37, %v1196_v13 }
 0x411   : > { %v1276_v22 = vadd.f32 %v1275_v0, %v1197_v15  ;;  %v1342_v0 = vpop.permute.xlu2 %1341  ;;  %v1347_v15 = vpop.permute.xlu0 %1346 }
 0x412   : > { %v1294_v52 = vmax.f32 %v1247_v26, 0.0 }
 0x413   : > { %v1295_v54 = vmax.f32 %v1276_v22, 0.0 }
 0x414   : > { %v1358_v62 = vmul.f32 %v1327_v32, %v1294_v52 }
 0x415   : > { %v1359_v43 = vmul.f32 %v1327_v32, %v1295_v54  ;;  %v1207_v32 = vld [vmem:[%s2573_s8 + $0x78] sm:$0xff] }
 0x417   : > { %v1248_v1 = vpop.f32.mrf.mxu2  ;;  %v1384_v30 = vadd.f32 %v1383_v63, %v1359_v43 }
 0x418   : > { %v1277_v7 = vpop.f32.mrf.mxu3  ;;  %v1249_v5 = vadd.f32 %v1248_v1, %v1198_v17 }
 0x419   : > { %v1278_v29 = vadd.f32 %v1277_v7, %v1199_v9 }
 0x41a   : > { %v1296_v56 = vmax.f32 %v1249_v5, 0.0  ;;  %v1352_v5 = vpop.permute.xlu1 %1351 }
 0x41b   : > { %v1297_v47 = vmax.f32 %v1278_v29, 0.0 }
 0x41c   : > { %v1360_v60 = vmul.f32 %v1332_v44, %v1296_v56 }
 0x41d   : > { %v1361_v37 = vmul.f32 %v1332_v44, %v1297_v47  ;;  %v1410_v44 = vlaneseq }
 0x41f   : > { %v1251_v8 = vpop.f32.mrf.mxu2  ;;  %v1385_v31 = vadd.f32 %v1384_v30, %v1361_v37  ;;  %vm1412_vm2 = vcmp.lt.s32.totalorder %v1410_v44, 256 }
 0x420   : > { %v1280_v10 = vpop.f32.mrf.mxu3  ;;  %v1252_v48 = vadd.f32 %v1251_v8, %v1200_v34  ;;  %v1371_v8 = vadd.f32 %v1370_v59, %v1358_v62 }
 0x421   : > { %v1281_v24 = vadd.f32 %v1280_v10, %v1201_v18 }
 0x422   : > { %v1298_v16 = vmax.f32 %v1252_v48, 0.0  ;;  %v1372_v11 = vadd.f32 %v1371_v8, %v1360_v60 }
 0x423   : > { %v1299_v28 = vmax.f32 %v1281_v24, 0.0 }
 0x424   : > { %v1362_v1 = vmul.f32 %v1337_v2, %v1298_v16 }
 0x425   : > { %v1363_v10 = vmul.f32 %v1337_v2, %v1299_v28 }
 0x426   : > { %v1373_v17 = vadd.f32 %v1372_v11, %v1362_v1 }
 0x427   : > { %v1253_v3 = vpop.f32.mrf.mxu2  ;;  %v1386_v9 = vadd.f32 %v1385_v31, %v1363_v10 }
 0x428   : > { %v1282_v33 = vpop.f32.mrf.mxu3  ;;  %v1254_v23 = vadd.f32 %v1253_v3, %v1202_v49 }
 0x429   : > { %v1283_v57 = vadd.f32 %v1282_v33, %v1203_v53 }
 0x42a   : > { %v1300_v58 = vmax.f32 %v1254_v23, 0.0 }
 0x42b   : > { %v1301_v36 = vmax.f32 %v1283_v57, 0.0 }
 0x42c   : > { %v1364_v13 = vmul.f32 %v1342_v0, %v1300_v58 }
 0x42d   : > { %v1365_v14 = vmul.f32 %v1342_v0, %v1301_v36 }
 0x42e   : > { %v1374_v22 = vadd.f32 %v1373_v17, %v1364_v13 }
 0x42f   : > { %v1256_v27 = vpop.f32.mrf.mxu2  ;;  %v1387_v2 = vadd.f32 %v1386_v9, %v1365_v14 }
 0x430   : > { %v1285_v40 = vpop.f32.mrf.mxu3  ;;  %v1257_v51 = vadd.f32 %v1256_v27, %v1204_v55  ;;  %v1396_v55 = vld [vmem:[%s2575_s10] sm:$0x3] }
 0x431   : > { %v1286_v39 = vadd.f32 %v1285_v40, %v1205_v21  ;;  %v1399_v21 = vperm.slane %v1396_v55, 1  ;;  %v1398_v27 = vperm.slane %v1396_v55, 0 }
 0x432   : > { %v1302_v7 = vmax.f32 %v1257_v51, 0.0 }
 0x433   : > { %v1303_v6 = vmax.f32 %v1286_v39, 0.0 }
 0x434   : > { %v1366_v38 = vmul.f32 %v1347_v15, %v1302_v7 }
 0x435   : > { %v1367_v42 = vmul.f32 %v1347_v15, %v1303_v6 }
 0x436   : > { %v1375_v18 = vadd.f32 %v1374_v22, %v1366_v38 }
 0x437   : > { %v1258_v4 = vpop.f32.mrf.mxu2  ;;  %v1388_v29 = vadd.f32 %v1387_v2, %v1367_v42 }
 0x438   : > { %v1287_v3 = vpop.f32.mrf.mxu3  ;;  %v1259_v26 = vadd.f32 %v1258_v4, %v1206_v12 }
 0x439   : > { %v1288_v33 = vadd.f32 %v1287_v3, %v1207_v32 }
 0x43a   : > { %v1304_v34 = vmax.f32 %v1259_v26, 0.0 }
 0x43b   : > { %v1305_v35 = vmax.f32 %v1288_v33, 0.0 }
 0x43c   : > { %v1368_v19 = vmul.f32 %v1352_v5, %v1304_v34 }
 0x43d   : > { %v1369_v49 = vmul.f32 %v1352_v5, %v1305_v35 }
 0x43e   : > { %v1376_v50 = vadd.f32 %v1375_v18, %v1368_v19 }
 0x43f   : > { %v1389_v25 = vadd.f32 %v1388_v29, %v1369_v49 }
 0x440   : > { %v1377_v52 = vrot.slane %v1376_v50, 4 }
 0x441   : > { %v1390_v48 = vrot.slane %v1389_v25, 4 }
 0x442   : > { %v1378_v53 = vadd.f32 %v1377_v52, %v1376_v50 }
 0x443   : > { %v1391_v41 = vadd.f32 %v1390_v48, %v1389_v25 }
 0x444   : > { %v1379_v54 = vrot.slane %v1378_v53, 2 }
 0x445   : > { %v1392_v24 = vrot.slane %v1391_v41, 2 }
 0x446   : > { %v1380_v56 = vadd.f32 %v1379_v54, %v1378_v53 }
 0x447   : > { %v1393_v23 = vadd.f32 %v1392_v24, %v1391_v41 }
 0x448   : > { %v1381_v20 = vrot.slane %v1380_v56, 1 }
 0x449   : > { %v1394_v47 = vrot.slane %v1393_v23, 1 }
 0x44a   : > { %v1382_v57 = vadd.f32 %v1381_v20, %v1380_v56 }
 0x44b   : > { %v1395_v46 = vadd.f32 %v1394_v47, %v1393_v23 }
 0x44c   : > { %v1402_v61 = vadd.f32 %v1398_v27, %v1382_v57 }
 0x44d   : > { %v1403_v16 = vadd.f32 %v1399_v21, %v1395_v46 }
 0x44f   : > { %v1406_v62 = vrot.slane %v1403_v16, 7 }
 0x451   : > { %v1408_v40 = vsel %vm1407_vm1, %v1402_v61, %v1406_v62 }
 0x452   : > { %1414 = vst.msk [vmem:[%s404_s23] sm:$0x3] %vm1412_vm2, %v1408_v40 }
 0x453   : > { %1783 = shalt.err (!%p1780_p5)
}
 0x454   : > { %1697 = dma.vmem_to_hbm [thread:$0]  (%p1937_p4), %s1431_s24, 32, %s1433_s26, %s1416_s20  }
 0x455 PF: > { %p1703_p6 = scmp.ge.s32.totalorder %s1834_s22, 2  ;;  %s1444_s0 = sand.u32 1, %s1814_s17  }
 0x456   : > { %s1445_s23 = scalar_lea.sflag [#allocation3], %s1444_s0 }
 0x457   : > { %p1700_p7 = pnand %p1703_p6, %p1944_p8 }
 0x459   : > { %p1701_p9 = pneg %p1700_p7 }
 0x45b   : > { %1809 = dma.done.wait (%p1701_p9), %s1445_s23, 32  }
 0x45c   : > { %1811 = vsyncadd (%p1701_p9), %s1445_s23, 4294967264  ;;  %s24_s22 = sadd.s32 1, %s1834_s22   ;;  %s2583_s17 = smov %s1818_s18 }
 0x45d   : > { %p21_p10 = scmp.ge.s32.totalorder %s24_s22, 4   ;;  %s2584_s18 = smov %s1822_s19 }
 0x45e   : > { %s2585_s19 = smov %s1950_s30  ;;  %s2586_s20 = smov %s1830_s21 }
 0x45f   : > { %s2587_s21 = smov %s2589_s25  ;;  %23 = sbr.rel (!%p21_p10) target bundleno = 7 (0x7), region = 99 }
 0x464   :  { %1451 = vsyncpa [#allocation3], 1 }
 0x465   :  { %1453 = vsyncpa [#allocation3 + $0x1], 1 }

</bundles_post_ra>
